<compile_context>
chip_gen: v5e
topology: v5e:2x2
jax: 0.10.0
libtpu: 0.0.40
codegen_flags: <defaults>
</compile_context>

<pallas_src>
import functools
import math

import jax
import jax.numpy as jnp
from jax import lax
from jax.experimental import pallas as pl
from jax.experimental.pallas import tpu as pltpu

EPS = 1e-5
_BIG_NEG = -1e30                     # finite mask value (avoids inf/NaN traps)


# ----------------------- hardware-aware configuration ------------------------
def _vmem_capacity_bytes():
    try:
        info = pltpu.get_tpu_info()
        for name in ("vmem_capacity_bytes", "vmem_bytes", "vmem_size_bytes"):
            cap = getattr(info, name, None)
            if cap:
                return int(cap)
    except Exception:
        pass
    return 64 * 1024 * 1024          # conservative default (v7x per-core VMEM)


_VMEM_CAP = _vmem_capacity_bytes()
# v5e/v6e (128 MiB physical): ~96 MiB scoped limit; v7x (64 MiB): ~48 MiB.
_VMEM_LIMIT = max(32 * 1024 * 1024, min((_VMEM_CAP * 3) // 4, 100 * 1024 * 1024))
# Bigger seq tiles for the mem-bound stages when VMEM allows
# (measured: 256-row tiles ~63% of HBM roofline, 512-row ~85%).
_BIG_SEQ_TILE = 512 if _VMEM_CAP >= 96 * 1024 * 1024 else 256


# ------------------ single-buffered constant-weight blocks --------------------
_BUFFERED_OK = None


def _probe_buffered_single():
    """Runtime check that pipeline_mode=pl.Buffered(1) works end-to-end."""
    if not hasattr(pl, "Buffered"):
        return False
    try:
        def k(a_ref, b_ref, o_ref):
            o_ref[...] = a_ref[...] + b_ref[...]

        f = pl.pallas_call(
            k,
            out_shape=jax.ShapeDtypeStruct((16, 128), jnp.float32),
            grid=(2,),
            in_specs=[pl.BlockSpec((8, 128), lambda i: (i, 0)),
                      pl.BlockSpec((8, 128), lambda i: (0, 0),
                                   pipeline_mode=pl.Buffered(1))],
            out_specs=pl.BlockSpec((8, 128), lambda i: (i, 0)),
        )
        jax.block_until_ready(
            f(jnp.ones((16, 128), jnp.float32), jnp.ones((8, 128), jnp.float32)))
        return True
    except Exception:
        return False


def _buffered_ok():
    global _BUFFERED_OK
    if _BUFFERED_OK is None:
        _BUFFERED_OK = _probe_buffered_single()
    return _BUFFERED_OK


def _const_spec(shape):
    # Block whose index never changes across the grid: double-buffering it only
    # wastes VMEM, so request single buffering when supported.
    nd = len(shape)
    idx = lambda *_: (0,) * nd
    if _buffered_ok():
        return pl.BlockSpec(shape, idx, pipeline_mode=pl.Buffered(1))
    return pl.BlockSpec(shape, idx)


# ------------------------------ small helpers --------------------------------
def _pick_tile(n, max_tile=256, candidates=(512, 256, 128, 64, 32, 16, 8)):
    for c in candidates:
        if c <= max_tile and n % c == 0:
            return c
    return n                          # full extent (always legal)


def _pick_lane_tile(n, max_tile=512):
    # Tiles that land on the LAST (lane) dim of a block: keep them 128-multiples.
    return _pick_tile(n, max_tile, candidates=(512, 256, 128))


def _compiler_params(semantics):
    return pltpu.CompilerParams(dimension_semantics=semantics,
                                vmem_limit_bytes=_VMEM_LIMIT)


def _layernorm(x, scale, shift):
    # matches torch: mean / var (unbiased=False) over last dim, f32 statistics
    x = x.astype(jnp.float32)
    mean = jnp.mean(x, axis=-1, keepdims=True)
    var = jnp.mean((x - mean) ** 2, axis=-1, keepdims=True)
    norm = (x - mean) * lax.rsqrt(var + EPS)
    return scale * norm + shift


def _gelu(x):
    # matches the hand-written tanh GELU in the torch module
    c = math.sqrt(2.0 / math.pi)
    return 0.5 * x * (1.0 + jnp.tanh(c * (x + 0.044715 * x ** 3)))


# -------------------- 1) LN1 + fused QKV projection ---------------------------
def ln_qkv_kernel(x_ref, ln_s_ref, ln_b_ref, wqkv_ref, q_ref, k_ref, v_ref,
                  *, emb_dim, n_heads, q_scale):
    D, H = emb_dim, n_heads
    hd = D // H
    xn = _layernorm(x_ref[0], ln_s_ref[...], ln_b_ref[...]).astype(jnp.bfloat16)
    # One wide matmul (N = 3D) keeps the MXU pipeline full.
    qkv = jnp.dot(xn, wqkv_ref[...], preferred_element_type=jnp.float32)  # (tt,3D)
    tt = qkv.shape[0]
    q = (qkv[:, :D] * q_scale).reshape(tt, H, hd)      # fold 1/sqrt(hd) into Q
    k = qkv[:, D:2 * D].reshape(tt, H, hd)
    v = qkv[:, 2 * D:].reshape(tt, H, hd)
    # Head-split in VMEM (cheap tile transposes) instead of HBM relayout passes.
    q_hm = jnp.transpose(q, (1, 0, 2))                 # (H, tt, hd)
    k_hm = jnp.transpose(k, (1, 0, 2))                 # (H, tt, hd)
    v_hm = jnp.transpose(v, (1, 0, 2))                 # (H, tt, hd)
    q_ref[0] = q_hm.astype(q_ref.dtype)
    k_ref[0] = jnp.transpose(k_hm, (0, 2, 1)).astype(k_ref.dtype)   # (H, hd, tt)
    v_ref[0] = v_hm.astype(v_ref.dtype)


def ln_qkv_proj(x, ln_s, ln_b, wqkv, num_heads):
    B, T, D = x.shape
    hd = D // num_heads
    tt = _pick_lane_tile(T, max_tile=256)     # tt is the lane dim of the K^T block
    kernel = functools.partial(ln_qkv_kernel, emb_dim=D, n_heads=num_heads,
                               q_scale=1.0 / math.sqrt(hd))
    qv_sds = jax.ShapeDtypeStruct((B, num_heads, T, hd), jnp.bfloat16)
    kt_sds = jax.ShapeDtypeStruct((B, num_heads, hd, T), jnp.bfloat16)
    qv_spec = lambda: pl.BlockSpec((1, num_heads, tt, hd),
                                   lambda b, t: (b, 0, t, 0))
    kt_spec = pl.BlockSpec((1, num_heads, hd, tt), lambda b, t: (b, 0, 0, t))
    return pl.pallas_call(
        kernel,
        out_shape=(qv_sds, kt_sds, qv_sds),
        grid=(B, T // tt),
        in_specs=[pl.BlockSpec((1, tt, D), lambda b, t: (b, t, 0)),
                  _const_spec((1, D)), _const_spec((1, D)),
                  _const_spec((D, 3 * D))],
        out_specs=(qv_spec(), kt_spec, qv_spec()),
        compiler_params=_compiler_params(("parallel", "parallel")),
    )(x, ln_s, ln_b, wqkv)


# --------------------- 2) flash attention (online softmax) --------------------
def flash_attn_kernel(q_ref, kt_ref, v_ref, o_ref, m_sc, l_sc, acc_sc, *, t_tile):
    qi = pl.program_id(1)
    ki = pl.program_id(2)

    @pl.when(ki == 0)
    def _():
        m_sc[...] = jnp.full(m_sc.shape, -jnp.inf, m_sc.dtype)
        l_sc[...] = jnp.zeros(l_sc.shape, l_sc.dtype)
        acc_sc[...] = jnp.zeros(acc_sc.shape, acc_sc.dtype)

    def scores():
        # transpose-free QK^T: K stored pre-transposed (H, hd, tk)
        return jnp.einsum("hqd,hdk->hqk", q_ref[0], kt_ref[0],
                          preferred_element_type=jnp.float32)

    def online_update(s):
        m_prev = m_sc[...]
        m_new = jnp.maximum(m_prev, jnp.max(s, axis=-1, keepdims=True))
        alpha = jnp.exp(m_prev - m_new)
        p = jnp.exp(s - m_new)
        l_sc[...] = alpha * l_sc[...] + jnp.sum(p, axis=-1, keepdims=True)
        acc_sc[...] = alpha * acc_sc[...] + jnp.einsum(
            "hqk,hkd->hqd", p.astype(jnp.bfloat16), v_ref[0],
            preferred_element_type=jnp.float32)
        m_sc[...] = m_new

    # Strictly-below-diagonal kv tiles: no mask needed.
    @pl.when(ki < qi)
    def _():
        online_update(scores())

    # Diagonal tile: block-relative causal mask (qi == ki so offsets cancel).
    @pl.when(ki == qi)
    def _():
        s = scores()
        row = lax.broadcasted_iota(jnp.int32, (t_tile, t_tile), 0)
        col = lax.broadcasted_iota(jnp.int32, (t_tile, t_tile), 1)
        s = jnp.where((col > row)[None, :, :], jnp.float32(_BIG_NEG), s)
        online_update(s)

    # ki > qi tiles: compute skipped above; their K/V DMA is also skipped thanks
    # to the min(ki, qi) index_map in the wrapper.

    @pl.when(ki == pl.num_programs(2) - 1)
    def _():
        ctx = acc_sc[...] * pl.reciprocal(l_sc[...], approx=True)   # (H, tq, hd)
        H, tq, hd = ctx.shape
        merged = jnp.transpose(ctx, (1, 0, 2)).reshape(tq, H * hd)  # (tq, D)
        o_ref[0] = merged.astype(o_ref.dtype)                       # lane-dense


def flash_attention(q, kt, v):
    # q: (B,H,T,hd), kt: (B,H,hd,T), v: (B,H,T,hd); 1/sqrt(hd) folded into q.
    B, H, T, hd = q.shape
    D = H * hd
    tt = _pick_lane_tile(T, max_tile=256)
    nt = T // tt
    kernel = functools.partial(flash_attn_kernel, t_tile=tt)
    q_spec = pl.BlockSpec((1, H, tt, hd), lambda b, qi, ki: (b, 0, qi, 0))
    # Fully-masked (ki > qi) tiles revisit the previous kv block -> DMA skipped.
    kt_spec = pl.BlockSpec((1, H, hd, tt),
                           lambda b, qi, ki: (b, 0, 0, jnp.minimum(ki, qi)))
    v_spec = pl.BlockSpec((1, H, tt, hd),
                          lambda b, qi, ki: (b, 0, jnp.minimum(ki, qi), 0))
    o_spec = pl.BlockSpec((1, tt, D), lambda b, qi, ki: (b, qi, 0))
    # NOTE: the m/l/acc scratch carry is only correct because the kv axis is the
    # LAST grid dimension and marked "arbitrary" — do not reorder / parallelize.
    return pl.pallas_call(
        kernel,
        out_shape=jax.ShapeDtypeStruct((B, T, D), jnp.bfloat16),
        grid=(B, nt, nt),
        in_specs=[q_spec, kt_spec, v_spec],
        out_specs=o_spec,
        scratch_shapes=[pltpu.VMEM((H, tt, 1), jnp.float32),
                        pltpu.VMEM((H, tt, 1), jnp.float32),
                        pltpu.VMEM((H, tt, hd), jnp.float32)],
        compiler_params=_compiler_params(("parallel", "parallel", "arbitrary")),
    )(q, kt, v)


# ------ 3) fused: out-proj + residual + LN2 + FFN (H4-tiled) + residual -------
def block_tail_kernel(x_ref, ctx_ref, wo_ref, bo_ref, ln_s_ref, ln_b_ref,
                      w1_ref, b1_ref, w2_ref, b2_ref, o_ref,
                      res_sc, xn_sc, acc_sc):
    h = pl.program_id(2)

    @pl.when(h == 0)
    def _():
        attn = jnp.dot(ctx_ref[0], wo_ref[...],
                       preferred_element_type=jnp.float32) + bo_ref[...]
        res = x_ref[0] + attn                     # residual 1 (dropout = identity)
        res_sc[...] = res
        xn_sc[...] = _layernorm(res, ln_s_ref[...],
                                ln_b_ref[...]).astype(jnp.bfloat16)
        acc_sc[...] = jnp.zeros(acc_sc.shape, acc_sc.dtype)

    # FFN hidden-dim tile: h1 chunk -> GELU -> partial contribution to output.
    h1 = jnp.dot(xn_sc[...], w1_ref[...],
                 preferred_element_type=jnp.float32) + b1_ref[...]
    h1 = _gelu(h1).astype(jnp.bfloat16)
    acc_sc[...] += jnp.dot(h1, w2_ref[...], preferred_element_type=jnp.float32)

    @pl.when(h == pl.num_programs(2) - 1)
    def _():
        o_ref[0] = res_sc[...] + acc_sc[...] + b2_ref[...]   # residual 2


def attn_out_ffn_residual(x, ctx, wo, bo, ln_s, ln_b, w1, b1, w2, b2):
    B, T, D = x.shape
    H4 = w1.shape[1]
    tt = _pick_tile(T, max_tile=_BIG_SEQ_TILE)
    th = _pick_lane_tile(H4, max_tile=512)
    seq = lambda: pl.BlockSpec((1, tt, D), lambda b, t, h: (b, t, 0))
    return pl.pallas_call(
        block_tail_kernel,
        out_shape=jax.ShapeDtypeStruct((B, T, D), jnp.float32),
        grid=(B, T // tt, H4 // th),
        in_specs=[seq(), seq(),
                  _const_spec((D, D)), _const_spec((1, D)),
                  _const_spec((1, D)), _const_spec((1, D)),
                  pl.BlockSpec((D, th), lambda b, t, h: (0, h)),
                  pl.BlockSpec((1, th), lambda b, t, h: (0, h)),
                  pl.BlockSpec((th, D), lambda b, t, h: (h, 0)),
                  _const_spec((1, D))],
        out_specs=seq(),
        scratch_shapes=[pltpu.VMEM((tt, D), jnp.float32),    # residual
                        pltpu.VMEM((tt, D), jnp.bfloat16),   # LN2 output
                        pltpu.VMEM((tt, D), jnp.float32)],   # FFN accumulator
        compiler_params=_compiler_params(("parallel", "parallel", "arbitrary")),
    )(x, ctx, wo, bo, ln_s, ln_b, w1, b1, w2, b2)


# ------------- 4) final LayerNorm (hoisted) + LM head (vocab-tiled) -----------
def lm_head_kernel(x_ref, ln_s_ref, ln_b_ref, w_ref, o_ref, xn_sc):
    @pl.when(pl.program_id(2) == 0)
    def _():
        # LayerNorm computed once per (b, t) tile, reused across all vocab tiles.
        xn_sc[...] = _layernorm(x_ref[0], ln_s_ref[...],
                                ln_b_ref[...]).astype(jnp.bfloat16)
    o_ref[0] = jnp.dot(xn_sc[...], w_ref[...], preferred_element_type=jnp.float32)


def lm_head(x, ln_s, ln_b, w_out):
    B, T, D = x.shape
    V = w_out.shape[1]
    tt = _pick_tile(T, max_tile=_BIG_SEQ_TILE)
    tv = _pick_lane_tile(V, max_tile=512)
    return pl.pallas_call(
        lm_head_kernel,
        out_shape=jax.ShapeDtypeStruct((B, T, V), jnp.float32),
        grid=(B, T // tt, V // tv),
        in_specs=[pl.BlockSpec((1, tt, D), lambda b, t, v: (b, t, 0)),
                  _const_spec((1, D)), _const_spec((1, D)),
                  pl.BlockSpec((D, tv), lambda b, t, v: (0, v))],
        out_specs=pl.BlockSpec((1, tt, tv), lambda b, t, v: (b, t, v)),
        scratch_shapes=[pltpu.VMEM((tt, D), jnp.bfloat16)],
        compiler_params=_compiler_params(("parallel", "parallel", "arbitrary")),
    )(x, ln_s, ln_b, w_out)


# ------------------------------- parameter init -------------------------------
def init_params(key, config):
    V = config["vocab_size"]
    C = config["context_size"]
    D = config["emb_dim"]
    L = config["n_layers"]
    H4 = 4 * D

    def nrm(k, shape, dtype=jnp.float32):
        return (0.02 * jax.random.normal(k, shape, dtype=jnp.float32)).astype(dtype)

    keys = jax.random.split(key, 2 + 4 * L + 1)
    ki = iter(keys)

    params = {
        "tok_emb": nrm(next(ki), (V, D)),
        "pos_emb": nrm(next(ki), (C, D)),
        "layers": [],
        "lnf_scale": jnp.ones((1, D), jnp.float32),
        "lnf_shift": jnp.zeros((1, D), jnp.float32),
    }
    for _ in range(L):
        layer = (
            jnp.ones((1, D), jnp.float32),              # ln1 scale
            jnp.zeros((1, D), jnp.float32),             # ln1 shift
            nrm(next(ki), (D, 3 * D), jnp.bfloat16),    # fused Wqkv  (in, out)
            nrm(next(ki), (D, D), jnp.bfloat16),        # Wo
            jnp.zeros((1, D), jnp.float32),             # bo
            jnp.ones((1, D), jnp.float32),              # ln2 scale
            jnp.zeros((1, D), jnp.float32),             # ln2 shift
            nrm(next(ki), (D, H4), jnp.bfloat16),       # W1
            jnp.zeros((1, H4), jnp.float32),            # b1
            nrm(next(ki), (H4, D), jnp.bfloat16),       # W2
            jnp.zeros((1, D), jnp.float32),             # b2
        )
        params["layers"].append(layer)
    params["w_out"] = nrm(next(ki), (D, V), jnp.bfloat16)   # out_head, bias=False
    return params


# --------------------------------- forward ------------------------------------
def gpt_forward(token_ids, params, config):
    B, T = token_ids.shape
    H = config["n_heads"]

    # embedding lookup (glue, plain JAX); dropout = identity
    tok = jnp.take(params["tok_emb"], token_ids, axis=0)          # (B, T, D)
    pos = params["pos_emb"][:T][None, :, :]                       # (1, T, D)
    x = (tok + pos).astype(jnp.float32)

    for lp in params["layers"]:
        (ln1_s, ln1_b, wqkv, wo, bo, ln2_s, ln2_b, w1, b1, w2, b2) = lp
        q, kt, v = ln_qkv_proj(x, ln1_s, ln1_b, wqkv, H)          # head-split
        ctx = flash_attention(q, kt, v)                           # (B, T, D) bf16
        x = attn_out_ffn_residual(x, ctx, wo, bo, ln2_s, ln2_b, w1, b1, w2, b2)

    return lm_head(x, params["lnf_scale"], params["lnf_shift"], params["w_out"])


if __name__ == "__main__":
    config = {
        "vocab_size": 128,
        "context_size": 16,
        "emb_dim": 64,
        "n_heads": 4,
        "n_layers": 2,
        "drop_rate": 0.0,
        "qkv_bias": False,
    }

    key = jax.random.PRNGKey(0)
    pkey, dkey = jax.random.split(key)
    params = init_params(pkey, config)

    B, T = 2, 8
    token_ids = jax.random.randint(dkey, (B, T), 0, config["vocab_size"],
                                   dtype=jnp.int32)

    _buffered_ok()        # probe single-buffered-weight support once, outside jit

    fwd = jax.jit(functools.partial(gpt_forward, config=config))
    logits = jax.block_until_ready(fwd(token_ids, params))
    assert logits.shape == (B, T, config["vocab_size"])
    assert bool(jnp.all(jnp.isfinite(logits)))
    print("KERNEL_OK")
</pallas_src>

<mosaic_0001>
module attributes {stable_mosaic.version = 11 : i64} {
  func.func @k(%arg0: i32, %arg1: memref<8x128xf32, #tpu.memory_space<vmem>>, %arg2: memref<8x128xf32, #tpu.memory_space<vmem>>, %arg3: memref<8x128xf32, #tpu.memory_space<vmem>>) attributes {dimension_semantics = [#tpu.dimension_semantics<arbitrary>], iteration_bounds = array<i64: 2>, scalar_prefetch = 0 : i64, scratch_operands = 0 : i64, tpu.core_type = #tpu.core_type<tc>, window_params = [{transform_indices = @transform_0, window_bounds = array<i64: 8, 128>}, {pipeline_mode = #tpu.pipeline_mode<synchronous>, transform_indices = @transform_1, window_bounds = array<i64: 8, 128>}, {transform_indices = @transform_2, window_bounds = array<i64: 8, 128>}]} {
    %c0 = arith.constant 0 : index
    %c0_0 = arith.constant 0 : index
    %0 = vector.load %arg1[%c0, %c0_0] : memref<8x128xf32, #tpu.memory_space<vmem>>, vector<8x128xf32>
    %c0_1 = arith.constant 0 : index
    %c0_2 = arith.constant 0 : index
    %1 = vector.load %arg2[%c0_1, %c0_2] : memref<8x128xf32, #tpu.memory_space<vmem>>, vector<8x128xf32>
    %2 = arith.addf %0, %1 : vector<8x128xf32>
    %c0_3 = arith.constant 0 : index
    %c0_4 = arith.constant 0 : index
    %3 = vector.load %arg3[%c0_3, %c0_4] : memref<8x128xf32, #tpu.memory_space<vmem>>, vector<8x128xf32>
    tpu.vector_store %arg3[%c0_3, %c0_4], %2 {strides = array<i32>} : memref<8x128xf32, #tpu.memory_space<vmem>>, vector<8x128xf32>,
    return
  }
  func.func @transform_0(%arg0: i32) -> (i32, i32) {
    %c0_i32 = arith.constant 0 : i32
    %c0_i32_0 = arith.constant 0 : i32
    return %arg0, %c0_i32 : i32, i32
  }
  func.func @transform_1(%arg0: i32) -> (i32, i32) {
    %c0_i32 = arith.constant 0 : i32
    %c0_i32_0 = arith.constant 0 : i32
    %c0_i32_1 = arith.constant 0 : i32
    return %c0_i32, %c0_i32_0 : i32, i32
  }
  func.func @transform_2(%arg0: i32) -> (i32, i32) {
    %c0_i32 = arith.constant 0 : i32
    %c0_i32_0 = arith.constant 0 : i32
    return %arg0, %c0_i32 : i32, i32
  }
}

module attributes {stable_mosaic.version = 11 : i64} {
  func.func @block_tail_kernel(%arg0: i32, %arg1: i32, %arg2: i32, %arg3: memref<1x8x64xf32, #tpu.memory_space<vmem>>, %arg4: memref<1x8x64xbf16, #tpu.memory_space<vmem>>, %arg5: memref<64x64xbf16, #tpu.memory_space<vmem>>, %arg6: memref<1x64xf32, #tpu.memory_space<vmem>>, %arg7: memref<1x64xf32, #tpu.memory_space<vmem>>, %arg8: memref<1x64xf32, #tpu.memory_space<vmem>>, %arg9: memref<64x256xbf16, #tpu.memory_space<vmem>>, %arg10: memref<1x256xf32, #tpu.memory_space<vmem>>, %arg11: memref<256x64xbf16, #tpu.memory_space<vmem>>, %arg12: memref<1x64xf32, #tpu.memory_space<vmem>>, %arg13: memref<1x8x64xf32, #tpu.memory_space<vmem>>, %arg14: memref<8x64xf32, #tpu.memory_space<vmem>>, %arg15: memref<8x64xbf16, #tpu.memory_space<vmem>>, %arg16: memref<8x64xf32, #tpu.memory_space<vmem>>) attributes {dimension_semantics = [#tpu.dimension_semantics<parallel>, #tpu.dimension_semantics<parallel>, #tpu.dimension_semantics<arbitrary>], iteration_bounds = array<i64: 2, 1, 1>, scalar_prefetch = 0 : i64, scratch_operands = 3 : i64, tpu.core_type = #tpu.core_type<tc>, window_params = [{transform_indices = @transform_0, window_bounds = array<i64: 1, 8, 64>}, {transform_indices = @transform_1, window_bounds = array<i64: 1, 8, 64>}, {pipeline_mode = #tpu.pipeline_mode<synchronous>, transform_indices = @transform_2, window_bounds = array<i64: 64, 64>}, {pipeline_mode = #tpu.pipeline_mode<synchronous>, transform_indices = @transform_3, window_bounds = array<i64: 1, 64>}, {pipeline_mode = #tpu.pipeline_mode<synchronous>, transform_indices = @transform_4, window_bounds = array<i64: 1, 64>}, {pipeline_mode = #tpu.pipeline_mode<synchronous>, transform_indices = @transform_5, window_bounds = array<i64: 1, 64>}, {transform_indices = @transform_6, window_bounds = array<i64: 64, 256>}, {transform_indices = @transform_7, window_bounds = array<i64: 1, 256>}, {transform_indices = @transform_8, window_bounds = array<i64: 256, 64>}, {pipeline_mode = #tpu.pipeline_mode<synchronous>, transform_indices = @transform_9, window_bounds = array<i64: 1, 64>}, {transform_indices = @transform_10, window_bounds = array<i64: 1, 8, 64>}]} {
    %c0_i32 = arith.constant 0 : i32
    %0 = arith.cmpi eq, %arg2, %c0_i32 : i32
    %1 = arith.extui %0 : i1 to i32
    %c0_i32_0 = arith.constant 0 : i32
    %2 = arith.cmpi ne, %1, %c0_i32_0 : i32
    scf.if %2 {
      %c0_19 = arith.constant 0 : index
      %c0_20 = arith.constant 0 : index
      %c0_21 = arith.constant 0 : index
      %31 = vector.load %arg4[%c0_19, %c0_20, %c0_21] : memref<1x8x64xbf16, #tpu.memory_space<vmem>>, vector<1x8x64xbf16>
      %32 = vector.shape_cast %31 : vector<1x8x64xbf16> to vector<8x64xbf16>
      %c0_22 = arith.constant 0 : index
      %c0_23 = arith.constant 0 : index
      %33 = vector.load %arg5[%c0_22, %c0_23] : memref<64x64xbf16, #tpu.memory_space<vmem>>, vector<64x64xbf16>
      %cst_24 = arith.constant dense<0.000000e+00> : vector<8x64xf32>
      %34 = tpu.matmul %32, %33, %cst_24 {dimension_numbers = #tpu.dot_dimension_numbers<[1], [0], [0], [1], [0, 0, 1, 1], [], []>} : vector<8x64xbf16>, vector<64x64xbf16>, vector<8x64xf32> -> vector<8x64xf32>
      %c0_25 = arith.constant 0 : index
      %c0_26 = arith.constant 0 : index
      %35 = vector.load %arg6[%c0_25, %c0_26] : memref<1x64xf32, #tpu.memory_space<vmem>>, vector<1x64xf32>
      %36 = vector.broadcast %35 : vector<1x64xf32> to vector<8x64xf32>
      %37 = arith.addf %34, %36 : vector<8x64xf32>
      %c0_27 = arith.constant 0 : index
      %c0_28 = arith.constant 0 : index
      %c0_29 = arith.constant 0 : index
      %38 = vector.load %arg3[%c0_27, %c0_28, %c0_29] : memref<1x8x64xf32, #tpu.memory_space<vmem>>, vector<1x8x64xf32>
      %39 = vector.shape_cast %38 : vector<1x8x64xf32> to vector<8x64xf32>
      %40 = arith.addf %39, %37 : vector<8x64xf32>
      %c0_30 = arith.constant 0 : index
      %c0_31 = arith.constant 0 : index
      %41 = vector.load %arg14[%c0_30, %c0_31] : memref<8x64xf32, #tpu.memory_space<vmem>>, vector<8x64xf32>
      tpu.vector_store %arg14[%c0_30, %c0_31], %40 {strides = array<i32>} : memref<8x64xf32, #tpu.memory_space<vmem>>, vector<8x64xf32>,
      %c0_32 = arith.constant 0 : index
      %c0_33 = arith.constant 0 : index
      %42 = vector.load %arg7[%c0_32, %c0_33] : memref<1x64xf32, #tpu.memory_space<vmem>>, vector<1x64xf32>
      %c0_34 = arith.constant 0 : index
      %c0_35 = arith.constant 0 : index
      %43 = vector.load %arg8[%c0_34, %c0_35] : memref<1x64xf32, #tpu.memory_space<vmem>>, vector<1x64xf32>
      %cst_36 = arith.constant dense<0.000000e+00> : vector<8xf32>
      %44 = vector.multi_reduction <add>, %40, %cst_36 [1] : vector<8x64xf32> to vector<8xf32>
      %45 = vector.shape_cast %44 : vector<8xf32> to vector<8x1xf32>
      %cst_37 = arith.constant 6.400000e+01 : f32
      %46 = vector.broadcast %cst_37 : f32 to vector<8x1xf32>
      %47 = arith.divf %45, %46 : vector<8x1xf32>
      %48 = vector.broadcast %47 : vector<8x1xf32> to vector<8x64xf32>
      %49 = arith.subf %40, %48 : vector<8x64xf32>
      %50 = arith.mulf %49, %49 : vector<8x64xf32>
      %cst_38 = arith.constant dense<0.000000e+00> : vector<8xf32>
      %51 = vector.multi_reduction <add>, %50, %cst_38 [1] : vector<8x64xf32> to vector<8xf32>
      %52 = vector.shape_cast %51 : vector<8xf32> to vector<8x1xf32>
      %cst_39 = arith.constant 6.400000e+01 : f32
      %53 = vector.broadcast %cst_39 : f32 to vector<8x1xf32>
      %54 = arith.divf %52, %53 : vector<8x1xf32>
      %55 = vector.broadcast %47 : vector<8x1xf32> to vector<8x64xf32>
      %56 = arith.subf %40, %55 : vector<8x64xf32>
      %cst_40 = arith.constant 9.99999974E-6 : f32
      %57 = vector.broadcast %cst_40 : f32 to vector<8x1xf32>
      %58 = arith.addf %54, %57 : vector<8x1xf32>
      %59 = math.rsqrt %58 : vector<8x1xf32>
      %60 = vector.broadcast %59 : vector<8x1xf32> to vector<8x64xf32>
      %61 = arith.mulf %56, %60 : vector<8x64xf32>
      %62 = vector.broadcast %42 : vector<1x64xf32> to vector<8x64xf32>
      %63 = arith.mulf %62, %61 : vector<8x64xf32>
      %64 = vector.broadcast %43 : vector<1x64xf32> to vector<8x64xf32>
      %65 = arith.addf %63, %64 : vector<8x64xf32>
      %66 = arith.truncf %65 : vector<8x64xf32> to vector<8x64xbf16>
      %c0_41 = arith.constant 0 : index
      %c0_42 = arith.constant 0 : index
      %67 = vector.load %arg15[%c0_41, %c0_42] : memref<8x64xbf16, #tpu.memory_space<vmem>>, vector<8x64xbf16>
      tpu.vector_store %arg15[%c0_41, %c0_42], %66 {strides = array<i32>} : memref<8x64xbf16, #tpu.memory_space<vmem>>, vector<8x64xbf16>,
      %cst_43 = arith.constant 0.000000e+00 : f32
      %68 = vector.broadcast %cst_43 : f32 to vector<8x64xf32>
      %c0_44 = arith.constant 0 : index
      %c0_45 = arith.constant 0 : index
      %69 = vector.load %arg16[%c0_44, %c0_45] : memref<8x64xf32, #tpu.memory_space<vmem>>, vector<8x64xf32>
      tpu.vector_store %arg16[%c0_44, %c0_45], %68 {strides = array<i32>} : memref<8x64xf32, #tpu.memory_space<vmem>>, vector<8x64xf32>,
    } else {
    }
    %c0 = arith.constant 0 : index
    %c0_1 = arith.constant 0 : index
    %3 = vector.load %arg15[%c0, %c0_1] : memref<8x64xbf16, #tpu.memory_space<vmem>>, vector<8x64xbf16>
    %c0_2 = arith.constant 0 : index
    %c0_3 = arith.constant 0 : index
    %4 = vector.load %arg9[%c0_2, %c0_3] : memref<64x256xbf16, #tpu.memory_space<vmem>>, vector<64x256xbf16>
    %cst = arith.constant dense<0.000000e+00> : vector<8x256xf32>
    %5 = tpu.matmul %3, %4, %cst {dimension_numbers = #tpu.dot_dimension_numbers<[1], [0], [0], [1], [0, 0, 1, 1], [], []>} : vector<8x64xbf16>, vector<64x256xbf16>, vector<8x256xf32> -> vector<8x256xf32>
    %c0_4 = arith.constant 0 : index
    %c0_5 = arith.constant 0 : index
    %6 = vector.load %arg10[%c0_4, %c0_5] : memref<1x256xf32, #tpu.memory_space<vmem>>, vector<1x256xf32>
    %7 = vector.broadcast %6 : vector<1x256xf32> to vector<8x256xf32>
    %8 = arith.addf %5, %7 : vector<8x256xf32>
    %cst_6 = arith.constant 5.000000e-01 : f32
    %9 = vector.broadcast %cst_6 : f32 to vector<8x256xf32>
    %10 = arith.mulf %9, %8 : vector<8x256xf32>
    %11 = arith.mulf %8, %8 : vector<8x256xf32>
    %12 = arith.mulf %8, %11 : vector<8x256xf32>
    %cst_7 = arith.constant 4.471500e-02 : f32
    %13 = vector.broadcast %cst_7 : f32 to vector<8x256xf32>
    %14 = arith.mulf %13, %12 : vector<8x256xf32>
    %15 = arith.addf %8, %14 : vector<8x256xf32>
    %cst_8 = arith.constant 0.797884583 : f32
    %16 = vector.broadcast %cst_8 : f32 to vector<8x256xf32>
    %17 = arith.mulf %16, %15 : vector<8x256xf32>
    %18 = math.tanh %17 : vector<8x256xf32>
    %cst_9 = arith.constant 1.000000e+00 : f32
    %19 = vector.broadcast %cst_9 : f32 to vector<8x256xf32>
    %20 = arith.addf %19, %18 : vector<8x256xf32>
    %21 = arith.mulf %10, %20 : vector<8x256xf32>
    %22 = arith.truncf %21 : vector<8x256xf32> to vector<8x256xbf16>
    %c0_10 = arith.constant 0 : index
    %c0_11 = arith.constant 0 : index
    %23 = vector.load %arg16[%c0_10, %c0_11] : memref<8x64xf32, #tpu.memory_space<vmem>>, vector<8x64xf32>
    %c0_12 = arith.constant 0 : index
    %c0_13 = arith.constant 0 : index
    %24 = vector.load %arg11[%c0_12, %c0_13] : memref<256x64xbf16, #tpu.memory_space<vmem>>, vector<256x64xbf16>
    %cst_14 = arith.constant dense<0.000000e+00> : vector<8x64xf32>
    %25 = tpu.matmul %22, %24, %cst_14 {dimension_numbers = #tpu.dot_dimension_numbers<[1], [0], [0], [1], [0, 0, 1, 1], [], []>} : vector<8x256xbf16>, vector<256x64xbf16>, vector<8x64xf32> -> vector<8x64xf32>
    %26 = arith.addf %23, %25 : vector<8x64xf32>
    %c0_15 = arith.constant 0 : index
    %c0_16 = arith.constant 0 : index
    %27 = vector.load %arg16[%c0_15, %c0_16] : memref<8x64xf32, #tpu.memory_space<vmem>>, vector<8x64xf32>
    tpu.vector_store %arg16[%c0_15, %c0_16], %26 {strides = array<i32>} : memref<8x64xf32, #tpu.memory_space<vmem>>, vector<8x64xf32>,
    %c0_i32_17 = arith.constant 0 : i32
    %28 = arith.cmpi eq, %arg2, %c0_i32_17 : i32
    %29 = arith.extui %28 : i1 to i32
    %c0_i32_18 = arith.constant 0 : i32
    %30 = arith.cmpi ne, %29, %c0_i32_18 : i32
    scf.if %30 {
      %c0_19 = arith.constant 0 : index
      %c0_20 = arith.constant 0 : index
      %31 = vector.load %arg14[%c0_19, %c0_20] : memref<8x64xf32, #tpu.memory_space<vmem>>, vector<8x64xf32>
      %c0_21 = arith.constant 0 : index
      %c0_22 = arith.constant 0 : index
      %32 = vector.load %arg16[%c0_21, %c0_22] : memref<8x64xf32, #tpu.memory_space<vmem>>, vector<8x64xf32>
      %33 = arith.addf %31, %32 : vector<8x64xf32>
      %c0_23 = arith.constant 0 : index
      %c0_24 = arith.constant 0 : index
      %34 = vector.load %arg12[%c0_23, %c0_24] : memref<1x64xf32, #tpu.memory_space<vmem>>, vector<1x64xf32>
      %35 = vector.broadcast %34 : vector<1x64xf32> to vector<8x64xf32>
      %36 = arith.addf %33, %35 : vector<8x64xf32>
      %c0_25 = arith.constant 0 : index
      %c0_26 = arith.constant 0 : index
      %c0_27 = arith.constant 0 : index
      %37 = vector.load %arg13[%c0_25, %c0_26, %c0_27] : memref<1x8x64xf32, #tpu.memory_space<vmem>>, vector<1x8x64xf32>
      %38 = vector.shape_cast %37 : vector<1x8x64xf32> to vector<8x64xf32>
      %39 = vector.shape_cast %36 : vector<8x64xf32> to vector<1x8x64xf32>
      tpu.vector_store %arg13[%c0_25, %c0_26, %c0_27], %39 {strides = array<i32>} : memref<1x8x64xf32, #tpu.memory_space<vmem>>, vector<1x8x64xf32>,
    } else {
    }
    return
  }
  func.func @transform_0(%arg0: i32, %arg1: i32, %arg2: i32) -> (i32, i32, i32) {
    %c0_i32 = arith.constant 0 : i32
    %c0_i32_0 = arith.constant 0 : i32
    return %arg0, %arg1, %c0_i32 : i32, i32, i32
  }
  func.func @transform_1(%arg0: i32, %arg1: i32, %arg2: i32) -> (i32, i32, i32) {
    %c0_i32 = arith.constant 0 : i32
    %c0_i32_0 = arith.constant 0 : i32
    return %arg0, %arg1, %c0_i32 : i32, i32, i32
  }
  func.func @transform_2(%arg0: i32, %arg1: i32, %arg2: i32) -> (i32, i32) {
    %c0_i32 = arith.constant 0 : i32
    %c0_i32_0 = arith.constant 0 : i32
    %c0_i32_1 = arith.constant 0 : i32
    return %c0_i32, %c0_i32_0 : i32, i32
  }
  func.func @transform_3(%arg0: i32, %arg1: i32, %arg2: i32) -> (i32, i32) {
    %c0_i32 = arith.constant 0 : i32
    %c0_i32_0 = arith.constant 0 : i32
    %c0_i32_1 = arith.constant 0 : i32
    return %c0_i32, %c0_i32_0 : i32, i32
  }
  func.func @transform_4(%arg0: i32, %arg1: i32, %arg2: i32) -> (i32, i32) {
    %c0_i32 = arith.constant 0 : i32
    %c0_i32_0 = arith.constant 0 : i32
    %c0_i32_1 = arith.constant 0 : i32
    return %c0_i32, %c0_i32_0 : i32, i32
  }
  func.func @transform_5(%arg0: i32, %arg1: i32, %arg2: i32) -> (i32, i32) {
    %c0_i32 = arith.constant 0 : i32
    %c0_i32_0 = arith.constant 0 : i32
    %c0_i32_1 = arith.constant 0 : i32
    return %c0_i32, %c0_i32_0 : i32, i32
  }
  func.func @transform_6(%arg0: i32, %arg1: i32, %arg2: i32) -> (i32, i32) {
    %c0_i32 = arith.constant 0 : i32
    %c0_i32_0 = arith.constant 0 : i32
    return %c0_i32, %arg2 : i32, i32
  }
  func.func @transform_7(%arg0: i32, %arg1: i32, %arg2: i32) -> (i32, i32) {
    %c0_i32 = arith.constant 0 : i32
    %c0_i32_0 = arith.constant 0 : i32
    return %c0_i32, %arg2 : i32, i32
  }
  func.func @transform_8(%arg0: i32, %arg1: i32, %arg2: i32) -> (i32, i32) {
    %c0_i32 = arith.constant 0 : i32
    %c0_i32_0 = arith.constant 0 : i32
    return %arg2, %c0_i32 : i32, i32
  }
  func.func @transform_9(%arg0: i32, %arg1: i32, %arg2: i32) -> (i32, i32) {
    %c0_i32 = arith.constant 0 : i32
    %c0_i32_0 = arith.constant 0 : i32
    %c0_i32_1 = arith.constant 0 : i32
    return %c0_i32, %c0_i32_0 : i32, i32
  }
  func.func @transform_10(%arg0: i32, %arg1: i32, %arg2: i32) -> (i32, i32, i32) {
    %c0_i32 = arith.constant 0 : i32
    %c0_i32_0 = arith.constant 0 : i32
    return %arg0, %arg1, %c0_i32 : i32, i32, i32
  }
}

module attributes {stable_mosaic.version = 11 : i64} {
  func.func @ln_qkv_kernel(%arg0: i32, %arg1: i32, %arg2: memref<1x8x64xf32, #tpu.memory_space<vmem>>, %arg3: memref<1x64xf32, #tpu.memory_space<vmem>>, %arg4: memref<1x64xf32, #tpu.memory_space<vmem>>, %arg5: memref<64x192xbf16, #tpu.memory_space<vmem>>, %arg6: memref<1x4x8x16xbf16, #tpu.memory_space<vmem>>, %arg7: memref<1x4x16x8xbf16, #tpu.memory_space<vmem>>, %arg8: memref<1x4x8x16xbf16, #tpu.memory_space<vmem>>) attributes {dimension_semantics = [#tpu.dimension_semantics<parallel>, #tpu.dimension_semantics<parallel>], iteration_bounds = array<i64: 2, 1>, scalar_prefetch = 0 : i64, scratch_operands = 0 : i64, tpu.core_type = #tpu.core_type<tc>, window_params = [{transform_indices = @transform_0, window_bounds = array<i64: 1, 8, 64>}, {pipeline_mode = #tpu.pipeline_mode<synchronous>, transform_indices = @transform_1, window_bounds = array<i64: 1, 64>}, {pipeline_mode = #tpu.pipeline_mode<synchronous>, transform_indices = @transform_2, window_bounds = array<i64: 1, 64>}, {pipeline_mode = #tpu.pipeline_mode<synchronous>, transform_indices = @transform_3, window_bounds = array<i64: 64, 192>}, {transform_indices = @transform_4, window_bounds = array<i64: 1, 4, 8, 16>}, {transform_indices = @transform_5, window_bounds = array<i64: 1, 4, 16, 8>}, {transform_indices = @transform_6, window_bounds = array<i64: 1, 4, 8, 16>}]} {
    %c0 = arith.constant 0 : index
    %c0_0 = arith.constant 0 : index
    %c0_1 = arith.constant 0 : index
    %0 = vector.load %arg2[%c0, %c0_0, %c0_1] : memref<1x8x64xf32, #tpu.memory_space<vmem>>, vector<1x8x64xf32>
    %1 = vector.shape_cast %0 : vector<1x8x64xf32> to vector<8x64xf32>
    %c0_2 = arith.constant 0 : index
    %c0_3 = arith.constant 0 : index
    %2 = vector.load %arg3[%c0_2, %c0_3] : memref<1x64xf32, #tpu.memory_space<vmem>>, vector<1x64xf32>
    %c0_4 = arith.constant 0 : index
    %c0_5 = arith.constant 0 : index
    %3 = vector.load %arg4[%c0_4, %c0_5] : memref<1x64xf32, #tpu.memory_space<vmem>>, vector<1x64xf32>
    %cst = arith.constant dense<0.000000e+00> : vector<8xf32>
    %4 = vector.multi_reduction <add>, %1, %cst [1] : vector<8x64xf32> to vector<8xf32>
    %5 = vector.shape_cast %4 : vector<8xf32> to vector<8x1xf32>
    %cst_6 = arith.constant 6.400000e+01 : f32
    %6 = vector.broadcast %cst_6 : f32 to vector<8x1xf32>
    %7 = arith.divf %5, %6 : vector<8x1xf32>
    %8 = vector.broadcast %7 : vector<8x1xf32> to vector<8x64xf32>
    %9 = arith.subf %1, %8 : vector<8x64xf32>
    %10 = arith.mulf %9, %9 : vector<8x64xf32>
    %cst_7 = arith.constant dense<0.000000e+00> : vector<8xf32>
    %11 = vector.multi_reduction <add>, %10, %cst_7 [1] : vector<8x64xf32> to vector<8xf32>
    %12 = vector.shape_cast %11 : vector<8xf32> to vector<8x1xf32>
    %cst_8 = arith.constant 6.400000e+01 : f32
    %13 = vector.broadcast %cst_8 : f32 to vector<8x1xf32>
    %14 = arith.divf %12, %13 : vector<8x1xf32>
    %15 = vector.broadcast %7 : vector<8x1xf32> to vector<8x64xf32>
    %16 = arith.subf %1, %15 : vector<8x64xf32>
    %cst_9 = arith.constant 9.99999974E-6 : f32
    %17 = vector.broadcast %cst_9 : f32 to vector<8x1xf32>
    %18 = arith.addf %14, %17 : vector<8x1xf32>
    %19 = math.rsqrt %18 : vector<8x1xf32>
    %20 = vector.broadcast %19 : vector<8x1xf32> to vector<8x64xf32>
    %21 = arith.mulf %16, %20 : vector<8x64xf32>
    %22 = vector.broadcast %2 : vector<1x64xf32> to vector<8x64xf32>
    %23 = arith.mulf %22, %21 : vector<8x64xf32>
    %24 = vector.broadcast %3 : vector<1x64xf32> to vector<8x64xf32>
    %25 = arith.addf %23, %24 : vector<8x64xf32>
    %26 = arith.truncf %25 : vector<8x64xf32> to vector<8x64xbf16>
    %c0_10 = arith.constant 0 : index
    %c0_11 = arith.constant 0 : index
    %27 = vector.load %arg5[%c0_10, %c0_11] : memref<64x192xbf16, #tpu.memory_space<vmem>>, vector<64x192xbf16>
    %cst_12 = arith.constant dense<0.000000e+00> : vector<8x192xf32>
    %28 = tpu.matmul %26, %27, %cst_12 {dimension_numbers = #tpu.dot_dimension_numbers<[1], [0], [0], [1], [0, 0, 1, 1], [], []>} : vector<8x64xbf16>, vector<64x192xbf16>, vector<8x192xf32> -> vector<8x192xf32>
    %29 = vector.extract_strided_slice %28 {offsets = [0, 0], sizes = [8, 64], strides = [1, 1]} : vector<8x192xf32> to vector<8x64xf32>
    %cst_13 = arith.constant 2.500000e-01 : f32
    %30 = vector.broadcast %cst_13 : f32 to vector<8x64xf32>
    %31 = arith.mulf %29, %30 : vector<8x64xf32>
    %32 = vector.shape_cast %31 : vector<8x64xf32> to vector<8x4x16xf32>
    %33 = vector.extract_strided_slice %28 {offsets = [0, 64], sizes = [8, 64], strides = [1, 1]} : vector<8x192xf32> to vector<8x64xf32>
    %34 = vector.shape_cast %33 : vector<8x64xf32> to vector<8x4x16xf32>
    %35 = vector.extract_strided_slice %28 {offsets = [0, 128], sizes = [8, 64], strides = [1, 1]} : vector<8x192xf32> to vector<8x64xf32>
    %36 = vector.shape_cast %35 : vector<8x64xf32> to vector<8x4x16xf32>
    %37 = tpu.transpose %32, [1, 0, 2] : vector<8x4x16xf32> -> vector<4x8x16xf32>
    %38 = tpu.transpose %34, [1, 0, 2] : vector<8x4x16xf32> -> vector<4x8x16xf32>
    %39 = tpu.transpose %36, [1, 0, 2] : vector<8x4x16xf32> -> vector<4x8x16xf32>
    %40 = arith.truncf %37 : vector<4x8x16xf32> to vector<4x8x16xbf16>
    %c0_14 = arith.constant 0 : index
    %c0_15 = arith.constant 0 : index
    %c0_16 = arith.constant 0 : index
    %c0_17 = arith.constant 0 : index
    %41 = vector.load %arg6[%c0_14, %c0_15, %c0_16, %c0_17] : memref<1x4x8x16xbf16, #tpu.memory_space<vmem>>, vector<1x4x8x16xbf16>
    %42 = vector.shape_cast %41 : vector<1x4x8x16xbf16> to vector<4x8x16xbf16>
    %43 = vector.shape_cast %40 : vector<4x8x16xbf16> to vector<1x4x8x16xbf16>
    tpu.vector_store %arg6[%c0_14, %c0_15, %c0_16, %c0_17], %43 {strides = array<i32>} : memref<1x4x8x16xbf16, #tpu.memory_space<vmem>>, vector<1x4x8x16xbf16>,
    %44 = tpu.transpose %38, [0, 2, 1] : vector<4x8x16xf32> -> vector<4x16x8xf32>
    %45 = arith.truncf %44 : vector<4x16x8xf32> to vector<4x16x8xbf16>
    %c0_18 = arith.constant 0 : index
    %c0_19 = arith.constant 0 : index
    %c0_20 = arith.constant 0 : index
    %c0_21 = arith.constant 0 : index
    %46 = vector.load %arg7[%c0_18, %c0_19, %c0_20, %c0_21] : memref<1x4x16x8xbf16, #tpu.memory_space<vmem>>, vector<1x4x16x8xbf16>
    %47 = vector.shape_cast %46 : vector<1x4x16x8xbf16> to vector<4x16x8xbf16>
    %48 = vector.shape_cast %45 : vector<4x16x8xbf16> to vector<1x4x16x8xbf16>
    tpu.vector_store %arg7[%c0_18, %c0_19, %c0_20, %c0_21], %48 {strides = array<i32>} : memref<1x4x16x8xbf16, #tpu.memory_space<vmem>>, vector<1x4x16x8xbf16>,
    %49 = arith.truncf %39 : vector<4x8x16xf32> to vector<4x8x16xbf16>
    %c0_22 = arith.constant 0 : index
    %c0_23 = arith.constant 0 : index
    %c0_24 = arith.constant 0 : index
    %c0_25 = arith.constant 0 : index
    %50 = vector.load %arg8[%c0_22, %c0_23, %c0_24, %c0_25] : memref<1x4x8x16xbf16, #tpu.memory_space<vmem>>, vector<1x4x8x16xbf16>
    %51 = vector.shape_cast %50 : vector<1x4x8x16xbf16> to vector<4x8x16xbf16>
    %52 = vector.shape_cast %49 : vector<4x8x16xbf16> to vector<1x4x8x16xbf16>
    tpu.vector_store %arg8[%c0_22, %c0_23, %c0_24, %c0_25], %52 {strides = array<i32>} : memref<1x4x8x16xbf16, #tpu.memory_space<vmem>>, vector<1x4x8x16xbf16>,
    return
  }
  func.func @transform_0(%arg0: i32, %arg1: i32) -> (i32, i32, i32) {
    %c0_i32 = arith.constant 0 : i32
    %c0_i32_0 = arith.constant 0 : i32
    return %arg0, %arg1, %c0_i32 : i32, i32, i32
  }
  func.func @transform_1(%arg0: i32, %arg1: i32) -> (i32, i32) {
    %c0_i32 = arith.constant 0 : i32
    %c0_i32_0 = arith.constant 0 : i32
    %c0_i32_1 = arith.constant 0 : i32
    return %c0_i32, %c0_i32_0 : i32, i32
  }
  func.func @transform_2(%arg0: i32, %arg1: i32) -> (i32, i32) {
    %c0_i32 = arith.constant 0 : i32
    %c0_i32_0 = arith.constant 0 : i32
    %c0_i32_1 = arith.constant 0 : i32
    return %c0_i32, %c0_i32_0 : i32, i32
  }
  func.func @transform_3(%arg0: i32, %arg1: i32) -> (i32, i32) {
    %c0_i32 = arith.constant 0 : i32
    %c0_i32_0 = arith.constant 0 : i32
    %c0_i32_1 = arith.constant 0 : i32
    return %c0_i32, %c0_i32_0 : i32, i32
  }
  func.func @transform_4(%arg0: i32, %arg1: i32) -> (i32, i32, i32, i32) {
    %c0_i32 = arith.constant 0 : i32
    %c0_i32_0 = arith.constant 0 : i32
    %c0_i32_1 = arith.constant 0 : i32
    return %arg0, %c0_i32, %arg1, %c0_i32_0 : i32, i32, i32, i32
  }
  func.func @transform_5(%arg0: i32, %arg1: i32) -> (i32, i32, i32, i32) {
    %c0_i32 = arith.constant 0 : i32
    %c0_i32_0 = arith.constant 0 : i32
    %c0_i32_1 = arith.constant 0 : i32
    return %arg0, %c0_i32, %c0_i32_0, %arg1 : i32, i32, i32, i32
  }
  func.func @transform_6(%arg0: i32, %arg1: i32) -> (i32, i32, i32, i32) {
    %c0_i32 = arith.constant 0 : i32
    %c0_i32_0 = arith.constant 0 : i32
    %c0_i32_1 = arith.constant 0 : i32
    return %arg0, %c0_i32, %arg1, %c0_i32_0 : i32, i32, i32, i32
  }
}

module attributes {stable_mosaic.version = 11 : i64} {
  func.func @flash_attn_kernel(%arg0: i32, %arg1: i32, %arg2: i32, %arg3: memref<1x4x8x16xbf16, #tpu.memory_space<vmem>>, %arg4: memref<1x4x16x8xbf16, #tpu.memory_space<vmem>>, %arg5: memref<1x4x8x16xbf16, #tpu.memory_space<vmem>>, %arg6: memref<1x8x64xbf16, #tpu.memory_space<vmem>>, %arg7: memref<4x8x1xf32, #tpu.memory_space<vmem>>, %arg8: memref<4x8x1xf32, #tpu.memory_space<vmem>>, %arg9: memref<4x8x16xf32, #tpu.memory_space<vmem>>) attributes {dimension_semantics = [#tpu.dimension_semantics<parallel>, #tpu.dimension_semantics<parallel>, #tpu.dimension_semantics<arbitrary>], iteration_bounds = array<i64: 2, 1, 1>, scalar_prefetch = 0 : i64, scratch_operands = 3 : i64, tpu.core_type = #tpu.core_type<tc>, window_params = [{transform_indices = @transform_0, window_bounds = array<i64: 1, 4, 8, 16>}, {transform_indices = @transform_1, window_bounds = array<i64: 1, 4, 16, 8>}, {transform_indices = @transform_2, window_bounds = array<i64: 1, 4, 8, 16>}, {transform_indices = @transform_3, window_bounds = array<i64: 1, 8, 64>}]} {
    %c0_i32 = arith.constant 0 : i32
    %0 = arith.cmpi eq, %arg2, %c0_i32 : i32
    %1 = arith.extui %0 : i1 to i32
    %c0_i32_0 = arith.constant 0 : i32
    %2 = arith.cmpi ne, %1, %c0_i32_0 : i32
    scf.if %2 {
      %cst = arith.constant 0xFF800000 : f32
      %12 = vector.broadcast %cst : f32 to vector<4x8x1xf32>
      %c0 = arith.constant 0 : index
      %c0_5 = arith.constant 0 : index
      %c0_6 = arith.constant 0 : index
      %13 = vector.load %arg7[%c0, %c0_5, %c0_6] : memref<4x8x1xf32, #tpu.memory_space<vmem>>, vector<4x8x1xf32>
      tpu.vector_store %arg7[%c0, %c0_5, %c0_6], %12 {strides = array<i32>} : memref<4x8x1xf32, #tpu.memory_space<vmem>>, vector<4x8x1xf32>,
      %cst_7 = arith.constant 0.000000e+00 : f32
      %14 = vector.broadcast %cst_7 : f32 to vector<4x8x1xf32>
      %c0_8 = arith.constant 0 : index
      %c0_9 = arith.constant 0 : index
      %c0_10 = arith.constant 0 : index
      %15 = vector.load %arg8[%c0_8, %c0_9, %c0_10] : memref<4x8x1xf32, #tpu.memory_space<vmem>>, vector<4x8x1xf32>
      tpu.vector_store %arg8[%c0_8, %c0_9, %c0_10], %14 {strides = array<i32>} : memref<4x8x1xf32, #tpu.memory_space<vmem>>, vector<4x8x1xf32>,
      %cst_11 = arith.constant 0.000000e+00 : f32
      %16 = vector.broadcast %cst_11 : f32 to vector<4x8x16xf32>
      %c0_12 = arith.constant 0 : index
      %c0_13 = arith.constant 0 : index
      %c0_14 = arith.constant 0 : index
      %17 = vector.load %arg9[%c0_12, %c0_13, %c0_14] : memref<4x8x16xf32, #tpu.memory_space<vmem>>, vector<4x8x16xf32>
      tpu.vector_store %arg9[%c0_12, %c0_13, %c0_14], %16 {strides = array<i32>} : memref<4x8x16xf32, #tpu.memory_space<vmem>>, vector<4x8x16xf32>,
    } else {
    }
    %3 = arith.cmpi slt, %arg2, %arg1 : i32
    %4 = arith.extui %3 : i1 to i32
    %c0_i32_1 = arith.constant 0 : i32
    %5 = arith.cmpi ne, %4, %c0_i32_1 : i32
    scf.if %5 {
      %c0 = arith.constant 0 : index
      %c0_5 = arith.constant 0 : index
      %c0_6 = arith.constant 0 : index
      %c0_7 = arith.constant 0 : index
      %12 = vector.load %arg3[%c0, %c0_5, %c0_6, %c0_7] : memref<1x4x8x16xbf16, #tpu.memory_space<vmem>>, vector<1x4x8x16xbf16>
      %13 = vector.shape_cast %12 : vector<1x4x8x16xbf16> to vector<4x8x16xbf16>
      %c0_8 = arith.constant 0 : index
      %c0_9 = arith.constant 0 : index
      %c0_10 = arith.constant 0 : index
      %c0_11 = arith.constant 0 : index
      %14 = vector.load %arg4[%c0_8, %c0_9, %c0_10, %c0_11] : memref<1x4x16x8xbf16, #tpu.memory_space<vmem>>, vector<1x4x16x8xbf16>
      %15 = vector.shape_cast %14 : vector<1x4x16x8xbf16> to vector<4x16x8xbf16>
      "tpu.trace_start"() <{level = 10 : i32, message = "hqd,hdk->hqk"}> : () -> ()
      %cst = arith.constant dense<0.000000e+00> : vector<4x8x8xf32>
      %16 = tpu.matmul %13, %15, %cst {dimension_numbers = #tpu.dot_dimension_numbers<[2], [1], [1], [2], [0, 0, 0, 1, 1, 2], [0], [0]>} : vector<4x8x16xbf16>, vector<4x16x8xbf16>, vector<4x8x8xf32> -> vector<4x8x8xf32>
      "tpu.trace_stop"() : () -> ()
      %c0_12 = arith.constant 0 : index
      %c0_13 = arith.constant 0 : index
      %c0_14 = arith.constant 0 : index
      %17 = vector.load %arg7[%c0_12, %c0_13, %c0_14] : memref<4x8x1xf32, #tpu.memory_space<vmem>>, vector<4x8x1xf32>
      %cst_15 = arith.constant dense<0xFF800000> : vector<4x8xf32>
      %18 = vector.multi_reduction <maximumf>, %16, %cst_15 [2] : vector<4x8x8xf32> to vector<4x8xf32>
      %19 = vector.shape_cast %18 : vector<4x8xf32> to vector<4x8x1xf32>
      %20 = arith.maximumf %17, %19 : vector<4x8x1xf32>
      %21 = arith.subf %17, %20 : vector<4x8x1xf32>
      %22 = math.exp %21 : vector<4x8x1xf32>
      %23 = vector.broadcast %20 : vector<4x8x1xf32> to vector<4x8x8xf32>
      %24 = arith.subf %16, %23 : vector<4x8x8xf32>
      %25 = math.exp %24 : vector<4x8x8xf32>
      %c0_16 = arith.constant 0 : index
      %c0_17 = arith.constant 0 : index
      %c0_18 = arith.constant 0 : index
      %26 = vector.load %arg8[%c0_16, %c0_17, %c0_18] : memref<4x8x1xf32, #tpu.memory_space<vmem>>, vector<4x8x1xf32>
      %27 = arith.mulf %22, %26 : vector<4x8x1xf32>
      %cst_19 = arith.constant dense<0.000000e+00> : vector<4x8xf32>
      %28 = vector.multi_reduction <add>, %25, %cst_19 [2] : vector<4x8x8xf32> to vector<4x8xf32>
      %29 = vector.shape_cast %28 : vector<4x8xf32> to vector<4x8x1xf32>
      %30 = arith.addf %27, %29 : vector<4x8x1xf32>
      %c0_20 = arith.constant 0 : index
      %c0_21 = arith.constant 0 : index
      %c0_22 = arith.constant 0 : index
      %31 = vector.load %arg8[%c0_20, %c0_21, %c0_22] : memref<4x8x1xf32, #tpu.memory_space<vmem>>, vector<4x8x1xf32>
      tpu.vector_store %arg8[%c0_20, %c0_21, %c0_22], %30 {strides = array<i32>} : memref<4x8x1xf32, #tpu.memory_space<vmem>>, vector<4x8x1xf32>,
      %c0_23 = arith.constant 0 : index
      %c0_24 = arith.constant 0 : index
      %c0_25 = arith.constant 0 : index
      %32 = vector.load %arg9[%c0_23, %c0_24, %c0_25] : memref<4x8x16xf32, #tpu.memory_space<vmem>>, vector<4x8x16xf32>
      %33 = vector.broadcast %22 : vector<4x8x1xf32> to vector<4x8x16xf32>
      %34 = arith.mulf %33, %32 : vector<4x8x16xf32>
      %35 = arith.truncf %25 : vector<4x8x8xf32> to vector<4x8x8xbf16>
      %c0_26 = arith.constant 0 : index
      %c0_27 = arith.constant 0 : index
      %c0_28 = arith.constant 0 : index
      %c0_29 = arith.constant 0 : index
      %36 = vector.load %arg5[%c0_26, %c0_27, %c0_28, %c0_29] : memref<1x4x8x16xbf16, #tpu.memory_space<vmem>>, vector<1x4x8x16xbf16>
      %37 = vector.shape_cast %36 : vector<1x4x8x16xbf16> to vector<4x8x16xbf16>
      "tpu.trace_start"() <{level = 10 : i32, message = "hqk,hkd->hqd"}> : () -> ()
      %cst_30 = arith.constant dense<0.000000e+00> : vector<4x8x16xf32>
      %38 = tpu.matmul %35, %37, %cst_30 {dimension_numbers = #tpu.dot_dimension_numbers<[2], [1], [1], [2], [0, 0, 0, 1, 1, 2], [0], [0]>} : vector<4x8x8xbf16>, vector<4x8x16xbf16>, vector<4x8x16xf32> -> vector<4x8x16xf32>
      "tpu.trace_stop"() : () -> ()
      %39 = arith.addf %34, %38 : vector<4x8x16xf32>
      %c0_31 = arith.constant 0 : index
      %c0_32 = arith.constant 0 : index
      %c0_33 = arith.constant 0 : index
      %40 = vector.load %arg9[%c0_31, %c0_32, %c0_33] : memref<4x8x16xf32, #tpu.memory_space<vmem>>, vector<4x8x16xf32>
      tpu.vector_store %arg9[%c0_31, %c0_32, %c0_33], %39 {strides = array<i32>} : memref<4x8x16xf32, #tpu.memory_space<vmem>>, vector<4x8x16xf32>,
      %c0_34 = arith.constant 0 : index
      %c0_35 = arith.constant 0 : index
      %c0_36 = arith.constant 0 : index
      %41 = vector.load %arg7[%c0_34, %c0_35, %c0_36] : memref<4x8x1xf32, #tpu.memory_space<vmem>>, vector<4x8x1xf32>
      tpu.vector_store %arg7[%c0_34, %c0_35, %c0_36], %20 {strides = array<i32>} : memref<4x8x1xf32, #tpu.memory_space<vmem>>, vector<4x8x1xf32>,
    } else {
    }
    %6 = arith.cmpi eq, %arg2, %arg1 : i32
    %7 = arith.extui %6 : i1 to i32
    %c0_i32_2 = arith.constant 0 : i32
    %8 = arith.cmpi ne, %7, %c0_i32_2 : i32
    scf.if %8 {
      %c0 = arith.constant 0 : index
      %c0_5 = arith.constant 0 : index
      %c0_6 = arith.constant 0 : index
      %c0_7 = arith.constant 0 : index
      %12 = vector.load %arg3[%c0, %c0_5, %c0_6, %c0_7] : memref<1x4x8x16xbf16, #tpu.memory_space<vmem>>, vector<1x4x8x16xbf16>
      %13 = vector.shape_cast %12 : vector<1x4x8x16xbf16> to vector<4x8x16xbf16>
      %c0_8 = arith.constant 0 : index
      %c0_9 = arith.constant 0 : index
      %c0_10 = arith.constant 0 : index
      %c0_11 = arith.constant 0 : index
      %14 = vector.load %arg4[%c0_8, %c0_9, %c0_10, %c0_11] : memref<1x4x16x8xbf16, #tpu.memory_space<vmem>>, vector<1x4x16x8xbf16>
      %15 = vector.shape_cast %14 : vector<1x4x16x8xbf16> to vector<4x16x8xbf16>
      "tpu.trace_start"() <{level = 10 : i32, message = "hqd,hdk->hqk"}> : () -> ()
      %cst = arith.constant dense<0.000000e+00> : vector<4x8x8xf32>
      %16 = tpu.matmul %13, %15, %cst {dimension_numbers = #tpu.dot_dimension_numbers<[2], [1], [1], [2], [0, 0, 0, 1, 1, 2], [0], [0]>} : vector<4x8x16xbf16>, vector<4x16x8xbf16>, vector<4x8x8xf32> -> vector<4x8x8xf32>
      "tpu.trace_stop"() : () -> ()
      %17 = tpu.iota {dimensions = array<i32: 0>} : vector<8x8xi32>
      %18 = tpu.iota {dimensions = array<i32: 1>} : vector<8x8xi32>
      %19 = arith.cmpi sgt, %18, %17 : vector<8x8xi32>
      %20 = vector.shape_cast %19 : vector<8x8xi1> to vector<1x8x8xi1>
      %cst_12 = arith.constant -1.000000e+30 : f32
      %21 = vector.shape_cast %20 : vector<1x8x8xi1> to vector<1x8x8xi1>
      %22 = vector.broadcast %21 : vector<1x8x8xi1> to vector<4x8x8xi1>
      %23 = vector.broadcast %cst_12 : f32 to vector<4x8x8xf32>
      %24 = arith.select %22, %23, %16 : vector<4x8x8xi1>, vector<4x8x8xf32>
      %c0_13 = arith.constant 0 : index
      %c0_14 = arith.constant 0 : index
      %c0_15 = arith.constant 0 : index
      %25 = vector.load %arg7[%c0_13, %c0_14, %c0_15] : memref<4x8x1xf32, #tpu.memory_space<vmem>>, vector<4x8x1xf32>
      %cst_16 = arith.constant dense<0xFF800000> : vector<4x8xf32>
      %26 = vector.multi_reduction <maximumf>, %24, %cst_16 [2] : vector<4x8x8xf32> to vector<4x8xf32>
      %27 = vector.shape_cast %26 : vector<4x8xf32> to vector<4x8x1xf32>
      %28 = arith.maximumf %25, %27 : vector<4x8x1xf32>
      %29 = arith.subf %25, %28 : vector<4x8x1xf32>
      %30 = math.exp %29 : vector<4x8x1xf32>
      %31 = vector.broadcast %28 : vector<4x8x1xf32> to vector<4x8x8xf32>
      %32 = arith.subf %24, %31 : vector<4x8x8xf32>
      %33 = math.exp %32 : vector<4x8x8xf32>
      %c0_17 = arith.constant 0 : index
      %c0_18 = arith.constant 0 : index
      %c0_19 = arith.constant 0 : index
      %34 = vector.load %arg8[%c0_17, %c0_18, %c0_19] : memref<4x8x1xf32, #tpu.memory_space<vmem>>, vector<4x8x1xf32>
      %35 = arith.mulf %30, %34 : vector<4x8x1xf32>
      %cst_20 = arith.constant dense<0.000000e+00> : vector<4x8xf32>
      %36 = vector.multi_reduction <add>, %33, %cst_20 [2] : vector<4x8x8xf32> to vector<4x8xf32>
      %37 = vector.shape_cast %36 : vector<4x8xf32> to vector<4x8x1xf32>
      %38 = arith.addf %35, %37 : vector<4x8x1xf32>
      %c0_21 = arith.constant 0 : index
      %c0_22 = arith.constant 0 : index
      %c0_23 = arith.constant 0 : index
      %39 = vector.load %arg8[%c0_21, %c0_22, %c0_23] : memref<4x8x1xf32, #tpu.memory_space<vmem>>, vector<4x8x1xf32>
      tpu.vector_store %arg8[%c0_21, %c0_22, %c0_23], %38 {strides = array<i32>} : memref<4x8x1xf32, #tpu.memory_space<vmem>>, vector<4x8x1xf32>,
      %c0_24 = arith.constant 0 : index
      %c0_25 = arith.constant 0 : index
      %c0_26 = arith.constant 0 : index
      %40 = vector.load %arg9[%c0_24, %c0_25, %c0_26] : memref<4x8x16xf32, #tpu.memory_space<vmem>>, vector<4x8x16xf32>
      %41 = vector.broadcast %30 : vector<4x8x1xf32> to vector<4x8x16xf32>
      %42 = arith.mulf %41, %40 : vector<4x8x16xf32>
      %43 = arith.truncf %33 : vector<4x8x8xf32> to vector<4x8x8xbf16>
      %c0_27 = arith.constant 0 : index
      %c0_28 = arith.constant 0 : index
      %c0_29 = arith.constant 0 : index
      %c0_30 = arith.constant 0 : index
      %44 = vector.load %arg5[%c0_27, %c0_28, %c0_29, %c0_30] : memref<1x4x8x16xbf16, #tpu.memory_space<vmem>>, vector<1x4x8x16xbf16>
      %45 = vector.shape_cast %44 : vector<1x4x8x16xbf16> to vector<4x8x16xbf16>
      "tpu.trace_start"() <{level = 10 : i32, message = "hqk,hkd->hqd"}> : () -> ()
      %cst_31 = arith.constant dense<0.000000e+00> : vector<4x8x16xf32>
      %46 = tpu.matmul %43, %45, %cst_31 {dimension_numbers = #tpu.dot_dimension_numbers<[2], [1], [1], [2], [0, 0, 0, 1, 1, 2], [0], [0]>} : vector<4x8x8xbf16>, vector<4x8x16xbf16>, vector<4x8x16xf32> -> vector<4x8x16xf32>
      "tpu.trace_stop"() : () -> ()
      %47 = arith.addf %42, %46 : vector<4x8x16xf32>
      %c0_32 = arith.constant 0 : index
      %c0_33 = arith.constant 0 : index
      %c0_34 = arith.constant 0 : index
      %48 = vector.load %arg9[%c0_32, %c0_33, %c0_34] : memref<4x8x16xf32, #tpu.memory_space<vmem>>, vector<4x8x16xf32>
      tpu.vector_store %arg9[%c0_32, %c0_33, %c0_34], %47 {strides = array<i32>} : memref<4x8x16xf32, #tpu.memory_space<vmem>>, vector<4x8x16xf32>,
      %c0_35 = arith.constant 0 : index
      %c0_36 = arith.constant 0 : index
      %c0_37 = arith.constant 0 : index
      %49 = vector.load %arg7[%c0_35, %c0_36, %c0_37] : memref<4x8x1xf32, #tpu.memory_space<vmem>>, vector<4x8x1xf32>
      tpu.vector_store %arg7[%c0_35, %c0_36, %c0_37], %28 {strides = array<i32>} : memref<4x8x1xf32, #tpu.memory_space<vmem>>, vector<4x8x1xf32>,
    } else {
    }
    %c0_i32_3 = arith.constant 0 : i32
    %9 = arith.cmpi eq, %arg2, %c0_i32_3 : i32
    %10 = arith.extui %9 : i1 to i32
    %c0_i32_4 = arith.constant 0 : i32
    %11 = arith.cmpi ne, %10, %c0_i32_4 : i32
    scf.if %11 {
      %c0 = arith.constant 0 : index
      %c0_5 = arith.constant 0 : index
      %c0_6 = arith.constant 0 : index
      %12 = vector.load %arg9[%c0, %c0_5, %c0_6] : memref<4x8x16xf32, #tpu.memory_space<vmem>>, vector<4x8x16xf32>
      %c0_7 = arith.constant 0 : index
      %c0_8 = arith.constant 0 : index
      %c0_9 = arith.constant 0 : index
      %13 = vector.load %arg8[%c0_7, %c0_8, %c0_9] : memref<4x8x1xf32, #tpu.memory_space<vmem>>, vector<4x8x1xf32>
      %14 = tpu.reciprocal %13 {approx = true} : vector<4x8x1xf32> -> vector<4x8x1xf32>
      %15 = vector.broadcast %14 : vector<4x8x1xf32> to vector<4x8x16xf32>
      %16 = arith.mulf %12, %15 : vector<4x8x16xf32>
      %17 = tpu.transpose %16, [1, 0, 2] : vector<4x8x16xf32> -> vector<8x4x16xf32>
      %18 = vector.shape_cast %17 : vector<8x4x16xf32> to vector<8x64xf32>
      %19 = arith.truncf %18 : vector<8x64xf32> to vector<8x64xbf16>
      %c0_10 = arith.constant 0 : index
      %c0_11 = arith.constant 0 : index
      %c0_12 = arith.constant 0 : index
      %20 = vector.load %arg6[%c0_10, %c0_11, %c0_12] : memref<1x8x64xbf16, #tpu.memory_space<vmem>>, vector<1x8x64xbf16>
      %21 = vector.shape_cast %20 : vector<1x8x64xbf16> to vector<8x64xbf16>
      %22 = vector.shape_cast %19 : vector<8x64xbf16> to vector<1x8x64xbf16>
      tpu.vector_store %arg6[%c0_10, %c0_11, %c0_12], %22 {strides = array<i32>} : memref<1x8x64xbf16, #tpu.memory_space<vmem>>, vector<1x8x64xbf16>,
    } else {
    }
    return
  }
  func.func @transform_0(%arg0: i32, %arg1: i32, %arg2: i32) -> (i32, i32, i32, i32) {
    %c0_i32 = arith.constant 0 : i32
    %c0_i32_0 = arith.constant 0 : i32
    %c0_i32_1 = arith.constant 0 : i32
    return %arg0, %c0_i32, %arg1, %c0_i32_0 : i32, i32, i32, i32
  }
  func.func @transform_1(%arg0: i32, %arg1: i32, %arg2: i32) -> (i32, i32, i32, i32) {
    %0 = arith.minsi %arg2, %arg1 : i32
    %c0_i32 = arith.constant 0 : i32
    %c0_i32_0 = arith.constant 0 : i32
    %c0_i32_1 = arith.constant 0 : i32
    return %arg0, %c0_i32, %c0_i32_0, %0 : i32, i32, i32, i32
  }
  func.func @transform_2(%arg0: i32, %arg1: i32, %arg2: i32) -> (i32, i32, i32, i32) {
    %0 = arith.minsi %arg2, %arg1 : i32
    %c0_i32 = arith.constant 0 : i32
    %c0_i32_0 = arith.constant 0 : i32
    %c0_i32_1 = arith.constant 0 : i32
    return %arg0, %c0_i32, %0, %c0_i32_0 : i32, i32, i32, i32
  }
  func.func @transform_3(%arg0: i32, %arg1: i32, %arg2: i32) -> (i32, i32, i32) {
    %c0_i32 = arith.constant 0 : i32
    %c0_i32_0 = arith.constant 0 : i32
    return %arg0, %arg1, %c0_i32 : i32, i32, i32
  }
}

module attributes {stable_mosaic.version = 11 : i64} {
  func.func @lm_head_kernel(%arg0: i32, %arg1: i32, %arg2: i32, %arg3: memref<1x8x64xf32, #tpu.memory_space<vmem>>, %arg4: memref<1x64xf32, #tpu.memory_space<vmem>>, %arg5: memref<1x64xf32, #tpu.memory_space<vmem>>, %arg6: memref<64x128xbf16, #tpu.memory_space<vmem>>, %arg7: memref<1x8x128xf32, #tpu.memory_space<vmem>>, %arg8: memref<8x64xbf16, #tpu.memory_space<vmem>>) attributes {dimension_semantics = [#tpu.dimension_semantics<parallel>, #tpu.dimension_semantics<parallel>, #tpu.dimension_semantics<arbitrary>], iteration_bounds = array<i64: 2, 1, 1>, scalar_prefetch = 0 : i64, scratch_operands = 1 : i64, tpu.core_type = #tpu.core_type<tc>, window_params = [{transform_indices = @transform_0, window_bounds = array<i64: 1, 8, 64>}, {pipeline_mode = #tpu.pipeline_mode<synchronous>, transform_indices = @transform_1, window_bounds = array<i64: 1, 64>}, {pipeline_mode = #tpu.pipeline_mode<synchronous>, transform_indices = @transform_2, window_bounds = array<i64: 1, 64>}, {transform_indices = @transform_3, window_bounds = array<i64: 64, 128>}, {transform_indices = @transform_4, window_bounds = array<i64: 1, 8, 128>}]} {
    %c0_i32 = arith.constant 0 : i32
    %0 = arith.cmpi eq, %arg2, %c0_i32 : i32
    %1 = arith.extui %0 : i1 to i32
    %c0_i32_0 = arith.constant 0 : i32
    %2 = arith.cmpi ne, %1, %c0_i32_0 : i32
    scf.if %2 {
      %c0_7 = arith.constant 0 : index
      %c0_8 = arith.constant 0 : index
      %c0_9 = arith.constant 0 : index
      %9 = vector.load %arg3[%c0_7, %c0_8, %c0_9] : memref<1x8x64xf32, #tpu.memory_space<vmem>>, vector<1x8x64xf32>
      %10 = vector.shape_cast %9 : vector<1x8x64xf32> to vector<8x64xf32>
      %c0_10 = arith.constant 0 : index
      %c0_11 = arith.constant 0 : index
      %11 = vector.load %arg4[%c0_10, %c0_11] : memref<1x64xf32, #tpu.memory_space<vmem>>, vector<1x64xf32>
      %c0_12 = arith.constant 0 : index
      %c0_13 = arith.constant 0 : index
      %12 = vector.load %arg5[%c0_12, %c0_13] : memref<1x64xf32, #tpu.memory_space<vmem>>, vector<1x64xf32>
      %cst_14 = arith.constant dense<0.000000e+00> : vector<8xf32>
      %13 = vector.multi_reduction <add>, %10, %cst_14 [1] : vector<8x64xf32> to vector<8xf32>
      %14 = vector.shape_cast %13 : vector<8xf32> to vector<8x1xf32>
      %cst_15 = arith.constant 6.400000e+01 : f32
      %15 = vector.broadcast %cst_15 : f32 to vector<8x1xf32>
      %16 = arith.divf %14, %15 : vector<8x1xf32>
      %17 = vector.broadcast %16 : vector<8x1xf32> to vector<8x64xf32>
      %18 = arith.subf %10, %17 : vector<8x64xf32>
      %19 = arith.mulf %18, %18 : vector<8x64xf32>
      %cst_16 = arith.constant dense<0.000000e+00> : vector<8xf32>
      %20 = vector.multi_reduction <add>, %19, %cst_16 [1] : vector<8x64xf32> to vector<8xf32>
      %21 = vector.shape_cast %20 : vector<8xf32> to vector<8x1xf32>
      %cst_17 = arith.constant 6.400000e+01 : f32
      %22 = vector.broadcast %cst_17 : f32 to vector<8x1xf32>
      %23 = arith.divf %21, %22 : vector<8x1xf32>
      %24 = vector.broadcast %16 : vector<8x1xf32> to vector<8x64xf32>
      %25 = arith.subf %10, %24 : vector<8x64xf32>
      %cst_18 = arith.constant 9.99999974E-6 : f32
      %26 = vector.broadcast %cst_18 : f32 to vector<8x1xf32>
      %27 = arith.addf %23, %26 : vector<8x1xf32>
      %28 = math.rsqrt %27 : vector<8x1xf32>
      %29 = vector.broadcast %28 : vector<8x1xf32> to vector<8x64xf32>
      %30 = arith.mulf %25, %29 : vector<8x64xf32>
      %31 = vector.broadcast %11 : vector<1x64xf32> to vector<8x64xf32>
      %32 = arith.mulf %31, %30 : vector<8x64xf32>
      %33 = vector.broadcast %12 : vector<1x64xf32> to vector<8x64xf32>
      %34 = arith.addf %32, %33 : vector<8x64xf32>
      %35 = arith.truncf %34 : vector<8x64xf32> to vector<8x64xbf16>
      %c0_19 = arith.constant 0 : index
      %c0_20 = arith.constant 0 : index
      %36 = vector.load %arg8[%c0_19, %c0_20] : memref<8x64xbf16, #tpu.memory_space<vmem>>, vector<8x64xbf16>
      tpu.vector_store %arg8[%c0_19, %c0_20], %35 {strides = array<i32>} : memref<8x64xbf16, #tpu.memory_space<vmem>>, vector<8x64xbf16>,
    } else {
    }
    %c0 = arith.constant 0 : index
    %c0_1 = arith.constant 0 : index
    %3 = vector.load %arg8[%c0, %c0_1] : memref<8x64xbf16, #tpu.memory_space<vmem>>, vector<8x64xbf16>
    %c0_2 = arith.constant 0 : index
    %c0_3 = arith.constant 0 : index
    %4 = vector.load %arg6[%c0_2, %c0_3] : memref<64x128xbf16, #tpu.memory_space<vmem>>, vector<64x128xbf16>
    %cst = arith.constant dense<0.000000e+00> : vector<8x128xf32>
    %5 = tpu.matmul %3, %4, %cst {dimension_numbers = #tpu.dot_dimension_numbers<[1], [0], [0], [1], [0, 0, 1, 1], [], []>} : vector<8x64xbf16>, vector<64x128xbf16>, vector<8x128xf32> -> vector<8x128xf32>
    %c0_4 = arith.constant 0 : index
    %c0_5 = arith.constant 0 : index
    %c0_6 = arith.constant 0 : index
    %6 = vector.load %arg7[%c0_4, %c0_5, %c0_6] : memref<1x8x128xf32, #tpu.memory_space<vmem>>, vector<1x8x128xf32>
    %7 = vector.shape_cast %6 : vector<1x8x128xf32> to vector<8x128xf32>
    %8 = vector.shape_cast %5 : vector<8x128xf32> to vector<1x8x128xf32>
    tpu.vector_store %arg7[%c0_4, %c0_5, %c0_6], %8 {strides = array<i32>} : memref<1x8x128xf32, #tpu.memory_space<vmem>>, vector<1x8x128xf32>,
    return
  }
  func.func @transform_0(%arg0: i32, %arg1: i32, %arg2: i32) -> (i32, i32, i32) {
    %c0_i32 = arith.constant 0 : i32
    %c0_i32_0 = arith.constant 0 : i32
    return %arg0, %arg1, %c0_i32 : i32, i32, i32
  }
  func.func @transform_1(%arg0: i32, %arg1: i32, %arg2: i32) -> (i32, i32) {
    %c0_i32 = arith.constant 0 : i32
    %c0_i32_0 = arith.constant 0 : i32
    %c0_i32_1 = arith.constant 0 : i32
    return %c0_i32, %c0_i32_0 : i32, i32
  }
  func.func @transform_2(%arg0: i32, %arg1: i32, %arg2: i32) -> (i32, i32) {
    %c0_i32 = arith.constant 0 : i32
    %c0_i32_0 = arith.constant 0 : i32
    %c0_i32_1 = arith.constant 0 : i32
    return %c0_i32, %c0_i32_0 : i32, i32
  }
  func.func @transform_3(%arg0: i32, %arg1: i32, %arg2: i32) -> (i32, i32) {
    %c0_i32 = arith.constant 0 : i32
    %c0_i32_0 = arith.constant 0 : i32
    return %c0_i32, %arg2 : i32, i32
  }
  func.func @transform_4(%arg0: i32, %arg1: i32, %arg2: i32) -> (i32, i32, i32) {
    %c0_i32 = arith.constant 0 : i32
    return %arg0, %arg1, %arg2 : i32, i32, i32
  }
}

</mosaic_0001>

<bundles_post_ra>
// kernel: tpu_custom_call.1
= control target key start
LH: loop header
LB: loop body
LE: loop exit
PB: predicated region body
PF: predicated region fallthrough
CT: control target
= control target key end

     0   :  { %7 = vsyncpa [#allocation3], 0  ;;  %s633_s0 = inlined_call_operand.hbm [shape: f32[16,128], index: 0, kind: input, shape index: {}]   ;;  %s634_s1 = inlined_call_operand.hbm [shape: f32[8,128], index: 1, kind: input, shape index: {}]   ;;  %s635_s2 = inlined_call_operand.hbm [shape: f32[16,128], index: 2, kind: output, shape index: {}]  }
   0x1   :  { %9 = vsyncpa [#allocation3 + $0x1], 0 }
   0x2   :  { %10 = vsyncpa [#allocation6], 0 }
   0x3   :  { %11 = vsyncpa [#allocation4], 0 }
   0x4   :  { %13 = vsyncpa [#allocation4 + $0x1], 0  ;;  %s495_s9 = smov 0   ;;  %s497_s10 = smov 0  }
   0x5   :  { %s499_s11 = smov 0   ;;  %s501_s12 = smov 0  }
   0x6 LB: > { %s516_s13 = sadd.s32 4294967295, %s477_s12   ;;  %s276_s14 = sadd.s32 4294967294, %s477_s12   ;;  %s477_s12 = sphi %s501_s12, %s645_s12   ;;  %s473_s11 = sphi %s499_s11, %s644_s11   ;;  %s469_s10 = sphi %s497_s10, %s643_s10   ;;  %s465_s9 = sphi %s495_s9, %s642_s9  }
   0x7   : > { %p39_p0 = scmp.ne.s32.totalorder %s469_s10, %s465_s9  ;;  %p40_p1 = scmp.eq.s32.totalorder %s516_s13, 0 }
   0x8   : > { %p84_p2 = scmp.eq.s32.totalorder %s516_s13, 1  ;;  %p90_p3 = scmp.eq.s32.totalorder %s276_s14, 1 }
   0x9   : > { %p525_p4 = por %p40_p1, %p39_p0  ;;  %p277_p5 = scmp.ge.s32.totalorder %s477_s12, 1 }
   0xa   : > { %p530_p6 = por %p90_p3, %p39_p0  ;;  %p97_p7 = scmp.lt.s32.totalorder %s477_s12, 3 }
   0xb   : > { %s109_s19 = sshll.u32 %s634_s1, 4  ;;  %s479_s21 = smov [#allocation5]   ;;  %s110_s19 = int_to_ptr.hbm [resolvable:$true] %s109_s19 }
   0xc   : > { %p538_p8 = pnand %p277_p5, %p97_p7  ;;  %s111_s22 = sshll.u32 %s479_s21, 4  ;;  %s112_s22 = int_to_ptr.vmem [resolvable:$true] %s111_s22 }
   0xd   : > { %s548_s23 = sadd.s32 1, %s477_s12   ;;  %s26_s24 = sadd.s32 1, %s473_s11 }
   0xe   : > { %p298_p10 = pneg %p538_p8  ;;  %s23_s25 = ssub.s32 %s477_s12, %s548_s23 }
   0xf   : > { %p24_p12 = scmp.eq.s32.totalorder %s23_s25, 0  ;;  %p33_p13 = scmp.ne.s32.totalorder %s473_s11, %s469_s10 }
  0x10   : > { %p299_p11 = pnand %p298_p10, %p40_p1  ;;  %p34_p0 = scmp.eq.s32.totalorder %s477_s12, 0 }
  0x11   : > { %s557_s26 = scalar_select %p24_p12, %s473_s11, %s26_s24  }
  0x12   : > { %301 = dma.hbm_to_vmem [thread:$0]  (!%p299_p11), %s110_s19, 128, %s112_s22, [#allocation6]  }
  0x13   : > { %p561_p3 = por %p84_p2, %p33_p13  ;;  %p311_p5 = scmp.lt.s32.totalorder %s477_s12, 2 }
  0x14   : > { %s122_s28 = sand.u32 1, %s473_s11   ;;  %s281_s29 = sshll.u32 %s477_s12, 3 }
  0x15   : > { %p35_p7 = por %p34_p0, %p33_p13  ;;  %s280_s30 = sshll.u32 %s122_s28, 3 }
  0x16   : > { %s130_s5 = scalar_lea.hbm %s633_s0, %s281_s29  ;;  %s126_s7 = scalar_lea.vmem [#allocation2], %s280_s30 }
  0x17   : > { %s132_s6 = sshll.u32 %s130_s5, 4  ;;  %s134_s8 = sshll.u32 %s126_s7, 4  ;;  %s133_s6 = int_to_ptr.hbm [resolvable:$true] %s132_s6  ;;  %s135_s8 = int_to_ptr.vmem [resolvable:$true] %s134_s8 }
  0x18   : > { %p571_p10 = pnand %p311_p5, %p35_p7  ;;  %s123_s17 = scalar_lea.sflag [#allocation3], %s122_s28 }
  0x19   : > { %s377_s18 = sshra.s32 %s133_s6, 4  ;;  %s384_s24 = scalar_lea.hbm %s633_s0, 16  ;;  %s378_s18 = int_to_ptr.hbm [resolvable:$true] %s377_s18 }
  0x1a   : > { %s379_s19 = scalar_lea.hbm %s378_s18, 8  ;;  %p381_p11 = pneg %p571_p10 }
  0x1b   : > { %p380_p2 = scmp.ne.s32.totalorder %s378_s18, %s379_s19  ;;  %p385_p0 = scmp.lt.s32.totalorder %s378_s18, %s633_s0 }
  0x1c   : > { %p386_p5 = scmp.lt.s32.totalorder %s384_s24, %s379_s19 }
  0x1d   : > { %p382_p12 = pnand %p381_p11, %p380_p2 }
  0x1e   : > { %p387_p7 = por %p386_p5, %p385_p0 }
  0x1f   : > { %p383_p13 = pneg %p382_p12 }
  0x21   : > { %p388_p9 = pnand %p387_p7, %p383_p13 }
  0x23   : > { %391 = shalt.err (!%p388_p9)
}
  0x24   : > { %305 = dma.hbm_to_vmem [thread:$0]  (!%p571_p10), %s133_s6, 128, %s135_s8, %s123_s17  }
  0x25   : > { %143 = sbr.rel (%p538_p8) target bundleno = 60 (0x3c), region = 28  ;;  %s588_s28 = sand.u32 (!%p538_p8), 1, %s469_s10  }
  0x26   : > { %s283_s30 = sshll.u32 (!%p538_p8), %s588_s28, 3  ;;  %s146_s3 = scalar_lea.sflag (!%p538_p8), [#allocation3], %s588_s28 }
  0x27   : > { %s149_s4 = scalar_lea.vmem (!%p538_p8), [#allocation2], %s283_s30 }
  0x2a   : > { %452 = dma.done.wait (%p525_p4), %s146_s3, 128  }
  0x2b   : > { %454 = vsyncadd (%p525_p4), %s146_s3, 4294967168 }
  0x2c   : > { %456 = dma.done.wait (%p40_p1), [#allocation6], 128  }
  0x2d   : > { %458 = vsyncadd (%p40_p1), [#allocation6], 4294967168  ;;  %s287_s20 = sshll.u32 %s516_s13, 3  ;;  %s175_s8 = scalar_lea.vmem [#allocation7], %s283_s30  ;;  %v176_v0 = vld [vmem:[%s149_s4] sm:$0xff]  ;;  %v177_v1 = vld [vmem:[#allocation5] sm:$0xff] }
  0x2e   : > { %s191_s7 = scalar_lea.hbm %s635_s2, %s287_s20  ;;  %s193_s14 = sshll.u32 %s175_s8, 4  ;;  %v178_v2 = vadd.f32 %v177_v1, %v176_v0  ;;  %s194_s14 = int_to_ptr.vmem [resolvable:$true] %s193_s14 }
  0x2f   : > { %s195_s17 = sshll.u32 %s191_s7, 4  ;;  %s181_s15 = scalar_lea.sflag [#allocation4], %s588_s28  ;;  %s196_s17 = int_to_ptr.hbm [resolvable:$true] %s195_s17 }
  0x30   : > { %179 = vst [vmem:[%s175_s8] sm:$0xff] %v178_v2  ;;  %s421_s18 = sshra.s32 %s196_s17, 4  ;;  %s427_s22 = scalar_lea.hbm %s635_s2, 16  ;;  %s422_s18 = int_to_ptr.hbm [resolvable:$true] %s421_s18 }
  0x31   : > { %s423_s19 = scalar_lea.hbm %s422_s18, 8  ;;  %p428_p9 = scmp.lt.s32.totalorder %s422_s18, %s635_s2 }
  0x32   : > { %p424_p1 = scmp.ne.s32.totalorder %s422_s18, %s423_s19  ;;  %p429_p10 = scmp.lt.s32.totalorder %s427_s22, %s423_s19 }
  0x34   : > { %p425_p4 = pnand %p424_p1, %p561_p3  ;;  %p430_p2 = por %p429_p10, %p428_p9 }
  0x36   : > { %p426_p8 = pneg %p425_p4 }
  0x38   : > { %p431_p11 = pnand %p430_p2, %p426_p8 }
  0x3a   : > { %434 = shalt.err (!%p431_p11)
}
  0x3b   : > { %296 = dma.vmem_to_hbm [thread:$0]  (%p561_p3), %s194_s14, 128, %s196_s17, %s181_s15  }
  0x3c PF: > { %s207_s29 = sand.u32 1, %s465_s9   ;;  %p641_p12 = scmp.ge.s32.totalorder %s477_s12, 2 }
  0x3d   : > { %s208_s28 = scalar_lea.sflag [#allocation4], %s207_s29 }
  0x3e   : > { %p307_p13 = pnand %p641_p12, %p530_p6 }
  0x40   : > { %p308_p0 = pneg %p307_p13 }
  0x42   : > { %460 = dma.done.wait (%p308_p0), %s208_s28, 128  }
  0x43   : > { %462 = vsyncadd (%p308_p0), %s208_s28, 4294967168  ;;  %p16_p5 = scmp.ge.s32.totalorder %s548_s23, 4   ;;  %s642_s9 = smov %s469_s10 }
  0x44   : > { %s643_s10 = smov %s473_s11  ;;  %s644_s11 = smov %s557_s26 }
  0x45   : > { %s645_s12 = smov %s548_s23  ;;  %18 = sbr.rel (!%p16_p5) target bundleno = 6 (0x6), region = 77 }
  0x4a   :  { %214 = vsyncpa [#allocation3], 1 }
  0x4b   :  { %216 = vsyncpa [#allocation3 + $0x1], 1 }
  0x4c   :  { %217 = vsyncpa [#allocation6], 1 }
  0x4d   :  { %218 = vsyncpa [#allocation4], 1 }
  0x4e   :  { %220 = vsyncpa [#allocation4 + $0x1], 1 }

// kernel: gpt_forward.9
= control target key start
LH: loop header
LB: loop body
LE: loop exit
PB: predicated region body
PF: predicated region fallthrough
CT: control target
= control target key end

     0   :  { %s1273_s13 = smov 0   ;;  %s1275_s14 = smov 0   ;;  %s1449_s0 = inlined_call_operand.vmem [shape: f32[2,8,64], index: 0, kind: input, shape index: {}]   ;;  %s1450_s1 = inlined_call_operand.vmem [shape: bf16[2,8,64], index: 1, kind: input, shape index: {}]   ;;  %s1451_s2 = inlined_call_operand.vmem [shape: bf16[64,64], index: 2, kind: input, shape index: {}]   ;;  %s1452_s3 = inlined_call_operand.vmem [shape: f32[1,64], index: 3, kind: input, shape index: {}]   ;;  %s1453_s4 = inlined_call_operand.vmem [shape: f32[1,64], index: 4, kind: input, shape index: {}]   ;;  %s1454_s5 = inlined_call_operand.vmem [shape: f32[1,64], index: 5, kind: input, shape index: {}]   ;;  %s1455_s6 = inlined_call_operand.vmem [shape: bf16[64,256], index: 6, kind: input, shape index: {}]   ;;  %s1456_s7 = inlined_call_operand.vmem [shape: f32[1,256], index: 7, kind: input, shape index: {}]   ;;  %s1457_s8 = inlined_call_operand.vmem [shape: bf16[256,64], index: 8, kind: input, shape index: {}]   ;;  %s1458_s9 = inlined_call_operand.vmem [shape: f32[1,64], index: 9, kind: input, shape index: {}]   ;;  %s1459_s10 = inlined_call_operand.vmem [shape: f32[2,8,64], index: 10, kind: output, shape index: {}]  }
   0x1   :  { %s1277_s15 = smov 0  }
   0x2 LB: > { %s39_s16 = sadd.s32 1, %s1210_s14  ;;  %p1005_p0 = scmp.ge.s32.totalorder %s1214_s15, 1  ;;  %s1214_s15 = sphi %s1277_s15, %s20_s15   ;;  %s1210_s14 = sphi %s1275_s14, %s1461_s14   ;;  %s1206_s13 = sphi %s1273_s13, %s1460_s13  }
   0x3   : > { %p41_p1 = scmp.ge.s32.totalorder %s39_s16, 2  ;;  %p383_p2 = scmp.lt.s32.totalorder %s1214_s15, 3 }
   0x5   : > { %s1463_s16 = smov (%p41_p1, %s39_s16), 0  ;;  %p384_p3 = pnand %p1005_p0, %p383_p2 }
   0x6   : > { %p446_p4 = scmp.lt.s32.totalorder (!%p384_p3), %s1206_s13, 1 }
   0x7   : > { %387 = sbr.rel (%p384_p3) target bundleno = 736 (0x2e0), region = 60 }
   0xc   : > { %v1129_v0 = vld [vmem:[%s1451_s2 + $0x18] sm:$0xff]  ;;  %v1128_v1 = vld [vmem:[%s1451_s2 + $0x10] sm:$0xff]  ;;  %s1465_s13 = smov (!%p446_p4, %s1206_s13), 1  ;;  %v1127_v2 = vld [vmem:[%s1451_s2 + $0x8] sm:$0xff]  ;;  %vm526_vm0 = vcmask 523264   ;;  %v1216_v12 = vmov 64.0  }
   0xd   : > { %534 = vmatpush.bf16.msra.mxu1 %v1129_v0  ;;  %s1007_s23 = sshll.u32 %s1465_s13, 2  ;;  %v1126_v3 = vld [vmem:[%s1451_s2] sm:$0xff]  ;;  %s1006_s29 = sshll.u32 %s1465_s13, 3  ;;  %1184 = vrcp.f32 %v1216_v12  ;;  %v1052_v24 = vld [vmem:[%s1455_s6 + $0x30] sm:$0xf]  ;;  %v1145_v51 = vld [vmem:[%s1457_s8 + $0x38] sm:$0xff] }
   0xe   : > { %s459_s28 = scalar_lea.vmem %s1450_s1, %s1007_s23  ;;  %s452_s12 = scalar_lea.vmem %s1449_s0, %s1006_s29  ;;  %v1180_v5 = vld [vmem:[%s1452_s3] ss:$0 sm:$0xff]  ;;  %v1137_v25 = vld [vmem:[%s1455_s6 + $0x34] sm:$0xf0]  ;;  %v1136_v26 = vld [vmem:[%s1455_s6 + $0x34] sm:$0xf]  ;;  %823 = vmatpush.bf16.msra.mxu3 %v1145_v51 }
   0xf   : > { %v489_v4 = vld [vmem:[%s459_s28] sm:$0xf]  ;;  %v1053_v27 = vor.u32 %v1137_v25, %v1052_v24  ;;  %v1054_v28 = vld [vmem:[%s1455_s6 + $0x38] sm:$0xf0]  ;;  %v1135_v31 = vld [vmem:[%s1455_s6 + $0x24] sm:$0xf0]  ;;  %s483_s18 = scalar_lea.vmem %s1459_s10, %s1006_s29 }
  0x10   : > { %v543_v7 = vld [vmem:[%s452_s12] sm:$0xff]  ;;  %v1057_v29 = vor.u32 %v1136_v26, %v1054_v28  ;;  %v1046_v34 = vld [vmem:[%s1455_s6 + $0x28] sm:$0xf0]  ;;  %v1036_v36 = vld [vmem:[%s1455_s6 + $0x10] sm:$0xf]  ;;  %vm586_vm5 = vcmask 519168  }
  0x11   : > { %535 = vmatpush.bf16.msra.mxu1 %v1128_v1  ;;  %v1044_v30 = vld [vmem:[%s1455_s6 + $0x20] sm:$0xf]  ;;  %v1134_v32 = vld [vmem:[%s1455_s6 + $0x24] sm:$0xf]  ;;  %v1133_v37 = vld [vmem:[%s1455_s6 + $0x14] sm:$0xf0] }
  0x12   : > { %665 = vmatpush.bf16.msra.mxu2 %v1057_v29  ;;  %v1045_v33 = vor.u32 %v1135_v31, %v1044_v30  ;;  %v1049_v35 = vor.u32 %v1134_v32, %v1046_v34  ;;  %v1132_v38 = vld [vmem:[%s1455_s6 + $0x14] sm:$0xf]  ;;  %v1037_v39 = vor.u32 %v1133_v37, %v1036_v36  ;;  %v1038_v40 = vld [vmem:[%s1455_s6 + $0x18] sm:$0xf0]  ;;  %v1028_v42 = vld [vmem:[%s1455_s6] sm:$0xf] }
  0x13   : > { %v1185_v13 = vpop.eup %1184  ;;  %v1041_v41 = vor.u32 %v1132_v38, %v1038_v40  ;;  %v1131_v43 = vld [vmem:[%s1455_s6 + $0x4] sm:$0xf0]  ;;  %v1130_v44 = vld [vmem:[%s1455_s6 + $0x4] sm:$0xf]  ;;  %v1030_v47 = vld [vmem:[%s1455_s6 + $0x8] sm:$0xf0] }
  0x14   : > { %v552_v14 = vmul.f32 64.0, %v1185_v13  ;;  %vm556_vm1 = vweird.f32 %v1185_v13  ;;  %v1029_v46 = vor.u32 %v1131_v43, %v1028_v42  ;;  %v1033_v49 = vor.u32 %v1130_v44, %v1030_v47  ;;  %v1144_v52 = vld [vmem:[%s1457_s8 + $0x30] sm:$0xff]  ;;  %v1181_v59 = vld [vmem:[%s1453_s4] ss:$0 sm:$0xff]  ;;  %v1139_v12 = vld [vmem:[%s1457_s8 + $0x8] sm:$0xff] }
  0x15   : > { %536 = vmatpush.bf16.msra.mxu1 %v1127_v2  ;;  %824 = vmatpush.bf16.msra.mxu3 %v1144_v52  ;;  %v1182_v61 = vld [vmem:[%s1454_s5] ss:$0 sm:$0xff] }
  0x16   : > { %v553_v15 = vsub.f32 1.0, %v552_v14  ;;  %666 = vmatpush.bf16.msra.mxu2 %v1049_v35  ;;  %v1138_v14 = vld [vmem:[%s1457_s8] sm:$0xff] }
  0x18   : > { %v554_v16 = vmul.f32 %v1185_v13, %v553_v15  ;;  %v1147_v15 = vld [vmem:[%s1457_s8 + $0x48] sm:$0xff] }
  0x19   : > { %537 = vmatpush.bf16.msra.mxu1 %v1126_v3  ;;  %v1153_v3 = vld [vmem:[%s1457_s8 + $0x78] sm:$0xff] }
  0x1a   : > { %v555_v17 = vadd.f32 %v1185_v13, %v554_v16  ;;  %667 = vmatpush.bf16.msra.mxu2 %v1041_v41  ;;  %836 = vmatpush.bf16.msra.mxu0 %v1153_v3  ;;  %v598_v16 = vld [vmem:[%s1456_s7] sm:$0x3] }
  0x1c   : > { %1025 = vmatmul.msk.bf16.vlgmr.msra.gmra.mxu1 %vm526_vm0, %v489_v4  ;;  %v557_v18 = vsel %vm556_vm1, %v1185_v13, %v555_v17  ;;  %v1143_v4 = vld [vmem:[%s1457_s8 + $0x28] sm:$0xff]  ;;  %v1148_v13 = vld [vmem:[%s1457_s8 + $0x50] sm:$0xff]  ;;  %v1146_v17 = vld [vmem:[%s1457_s8 + $0x40] sm:$0xff] }
  0x1d   : > { %652 = vmatpush.bf16.msrb.mxu1 %v1053_v27  ;;  %825 = vmatpush.bf16.msra.mxu3 %v1143_v4 }
  0x1e   : > { %668 = vmatpush.bf16.msra.mxu2 %v1033_v49 }
  0x21   : > { %653 = vmatpush.bf16.msrb.mxu1 %v1045_v33 }
  0x25   : > { %654 = vmatpush.bf16.msrb.mxu1 %v1037_v39 }
  0x29   : > { %655 = vmatpush.bf16.msrb.mxu1 %v1029_v46  ;;  %v1217_v46 = vmov 0.0  }
  0x2a   : > { %588 = vst.msk [vmem:[#allocation4] sm:$0xff] %vm526_vm0, %v1217_v46 }
  0x99   : > { %v539_v6 = vpop.f32.mrf.mxu1 }
  0x9a   : > { %v540_v8 = vadd.f32 %v1180_v5, %v539_v6  ;;  %v1152_v5 = vld [vmem:[%s1457_s8 + $0x70] sm:$0xff]  ;;  %v1142_v6 = vld [vmem:[%s1457_s8 + $0x20] sm:$0xff] }
  0x9b   : > { %837 = vmatpush.bf16.msra.mxu0 %v1152_v5  ;;  %826 = vmatpush.bf16.msra.mxu3 %v1142_v6 }
  0x9c   : > { %v544_v9 = vadd.f32 %v543_v7, %v540_v8  ;;  %v1151_v7 = vld [vmem:[%s1457_s8 + $0x68] sm:$0xff]  ;;  %v1141_v8 = vld [vmem:[%s1457_s8 + $0x18] sm:$0xff] }
  0x9e   : > { %545 = vst.msk [vmem:[#allocation2] sm:$0xff] %vm526_vm0, %v544_v9  ;;  %v548_v10 = vsel %vm526_vm0, %v544_v9, 0.0 }
  0x9f   : > { %549 = vadd.xlane.f32.xlu0 %v548_v10  ;;  %838 = vmatpush.bf16.msra.mxu0 %v1151_v7  ;;  %v1140_v10 = vld [vmem:[%s1457_s8 + $0x10] sm:$0xff] }
  0xa0   : > { %827 = vmatpush.bf16.msra.mxu3 %v1141_v8 }
  0xa1   : > { %v541_v11 = vpop.f32.mrf.mxu1 }
  0xa2   : > { %v1149_v11 = vld [vmem:[%s1457_s8 + $0x58] sm:$0xff] }
  0xa4   : > { %828 = vmatpush.bf16.msra.mxu3 %v1140_v10 }
  0xa8   : > { %829 = vmatpush.bf16.msra.mxu3 %v1139_v12 }
  0xac   : > { %830 = vmatpush.bf16.msra.mxu3 %v1138_v14 }
 0x112   : > { %v550_v19 = vpop.xlane.xlu0 %549 }
 0x113   : > { %v558_v20 = vmul.f32 %v557_v18, %v550_v19 }
 0x115   : > { %v559_v21 = vsub.f32 %v544_v9, %v558_v20  ;;  %v1150_v9 = vld [vmem:[%s1457_s8 + $0x60] sm:$0xff] }
 0x116   : > { %839 = vmatpush.bf16.msra.mxu0 %v1150_v9 }
 0x117   : > { %v560_v22 = vmul.f32 %v559_v21, %v559_v21 }
 0x119   : > { %v561_v23 = vsel %vm526_vm0, %v560_v22, 0.0  ;;  %v601_v22 = vperm.slane %v598_v16, 1 }
 0x11a   : > { %562 = vadd.xlane.f32.xlu0 %v561_v23  ;;  %840 = vmatpush.bf16.msra.mxu0 %v1149_v11 }
 0x11e   : > { %841 = vmatpush.bf16.msra.mxu0 %v1148_v13 }
 0x122   : > { %842 = vmatpush.bf16.msra.mxu0 %v1147_v15 }
 0x126   : > { %843 = vmatpush.bf16.msra.mxu0 %v1146_v17 }
 0x18d   : > { %v563_v45 = vpop.xlane.xlu0 %562 }
 0x18e   : > { %v564_v48 = vmul.f32 %v563_v45, %v557_v18  ;;  %v600_v18 = vperm.slane %v598_v16, 0 }
 0x190   : > { %v565_v50 = vadd.f32 1e-05, %v564_v48  ;;  %v694_v48 = vld [vmem:[#allocation4] sm:$0xff] }
 0x192   : > { %1186 = vrsqrt.f32 %v565_v50  ;;  %vm572_vm3 = vweird.f32 %v565_v50 }
 0x198   : > { %v1187_v53 = vpop.eup %1186 }
 0x199   : > { %v567_v54 = vmul.f32 %v1187_v53, %v565_v50  ;;  %vm573_vm2 = vweird.f32 %v1187_v53 }
 0x19a   : > { %vm574_vm4 = vmor %vm572_vm3, %vm573_vm2 }
 0x19b   : > { %v568_v55 = vmul.f32 %v1187_v53, %v567_v54  ;;  %v1183_v54 = vld [vmem:[%s1458_s9] ss:$0 sm:$0xff] }
 0x19d   : > { %v569_v56 = vmul.f32 0.5, %v568_v55  ;;  %v854_v55 = vld [vmem:[#allocation2] sm:$0xff] }
 0x19f   : > { %v570_v57 = vsub.f32 1.5, %v569_v56 }
 0x1a1   : > { %v571_v58 = vmul.f32 %v1187_v53, %v570_v57 }
 0x1a3   : > { %v575_v60 = vsel %vm574_vm4, %v1187_v53, %v571_v58 }
 0x1a4   : > { %v576_v62 = vmul.f32 %v575_v60, %v559_v21 }
 0x1a6   : > { %v580_v63 = vmul.f32 %v1181_v59, %v576_v62 }
 0x1a8   : > { %v584_v0 = vadd.f32 %v1182_v61, %v580_v63 }
 0x1aa   : > { %v585_v1 = vpack.c.bf16 %v584_v0, %v584_v0 }
 0x1ac   : > { %587 = vst.msk [vmem:[#allocation3] sm:$0xf] %vm586_vm5, %v585_v1 }
 0x1b3   : > { %v589_v2 = vld [vmem:[#allocation3] sm:$0xf] }
 0x1b4   : > { %1058 = vmatmul.msk.bf16.vlgmr.msrb.gmra.mxu1 %vm526_vm0, %v589_v2  ;;  %1059 = vmatmul.msk.bf16.vlgmr.msra.gmra.mxu2 %vm526_vm0, %v589_v2 }
 0x231   : > { %v657_v19 = vpop.f32.mrf.mxu1 }
 0x232   : > { %v658_v20 = vadd.f32 %v657_v19, %v600_v18 }
 0x234   : > { %v676_v21 = vmul.f32 %v658_v20, %v658_v20  ;;  %v674_v37 = vmul.f32 0.5, %v658_v20 }
 0x236   : > { %v678_v23 = vmul.f32 %v676_v21, %v658_v20 }
 0x237   : > { %v670_v24 = vpop.f32.mrf.mxu2 }
 0x238   : > { %v671_v25 = vadd.f32 %v670_v24, %v601_v22  ;;  %v680_v26 = vmul.f32 0.044715, %v678_v23 }
 0x239   : > { %v659_v27 = vpop.f32.mrf.mxu1 }
 0x23a   : > { %v677_v28 = vmul.f32 %v671_v25, %v671_v25  ;;  %v682_v29 = vadd.f32 %v680_v26, %v658_v20  ;;  %v675_v42 = vmul.f32 0.5, %v671_v25 }
 0x23c   : > { %v679_v30 = vmul.f32 %v677_v28, %v671_v25  ;;  %v684_v31 = vmul.f32 0.7978846, %v682_v29 }
 0x23e   : > { %1188 = vtanh.f32 %v684_v31  ;;  %v681_v32 = vmul.f32 0.044715, %v679_v30 }
 0x23f   : > { %v672_v33 = vpop.f32.mrf.mxu2 }
 0x240   : > { %v683_v34 = vadd.f32 %v681_v32, %v671_v25 }
 0x242   : > { %v685_v35 = vmul.f32 0.7978846, %v683_v34 }
 0x244   : > { %v1189_v36 = vpop.eup %1188  ;;  %1190 = vtanh.f32 %v685_v35 }
 0x245   : > { %v688_v38 = vadd.f32 1.0, %v1189_v36 }
 0x247   : > { %v690_v39 = vmul.f32 %v688_v38, %v674_v37 }
 0x249   : > { %v692_v40 = vpack.c.bf16 %v690_v39, %v690_v39 }
 0x24a   : > { %v1191_v41 = vpop.eup %1190 }
 0x24b   : > { %831 = vmatmul.bf16.vlgmr.msra.gmra.mxu3 %v692_v40  ;;  %v689_v43 = vadd.f32 1.0, %v1191_v41 }
 0x24d   : > { %v691_v44 = vmul.f32 %v689_v43, %v675_v42 }
 0x24f   : > { %v693_v45 = vpack.c.bf16 %v691_v44, %v691_v44 }
 0x251   : > { %844 = vmatmul.bf16.vlgmr.msra.gmra.mxu0 %v693_v45 }
 0x2ce   : > { %v832_v47 = vpop.f32.mrf.mxu3  ;;  %v845_v49 = vpop.f32.mrf.mxu0 }
 0x2cf   : > { %v846_v50 = vadd.f32 %v845_v49, %v832_v47 }
 0x2d1   : > { %v849_v51 = vadd.f32 %v846_v50, %v694_v48 }
 0x2d3   : > { %850 = vst.msk [vmem:[#allocation4] sm:$0xff] %vm526_vm0, %v849_v51 }
 0x2d6   : > { %v834_v52 = vpop.f32.mrf.mxu3  ;;  %v847_v53 = vpop.f32.mrf.mxu0 }
 0x2da   : > { %v855_v56 = vld [vmem:[#allocation4] sm:$0xff] }
 0x2db   : > { %v856_v57 = vadd.f32 %v855_v56, %v854_v55 }
 0x2dd   : > { %v861_v58 = vadd.f32 %v1183_v54, %v856_v57 }
 0x2df   : > { %862 = vst.msk [vmem:[%s483_s18] sm:$0xff] %vm526_vm0, %v861_v58 }
 0x2e0 PF: > { %s20_s15 = sadd.s32 1, %s1214_s15   ;;  %s1460_s13 = smov %s1210_s14 }
 0x2e1   : > { %p17_p5 = scmp.ge.s32.totalorder %s20_s15, 4   ;;  %s1461_s14 = smov %s1463_s16 }
 0x2e3   :  { %19 = sbr.rel (!%p17_p5) target bundleno = 2 (0x2), region = 110 }

// kernel: gpt_forward.7
= control target key start
LH: loop header
LB: loop body
LE: loop exit
PB: predicated region body
PF: predicated region fallthrough
CT: control target
= control target key end

     0   :  { %s1360_s21 = smov 0   ;;  %s1362_s22 = smov 0   ;;  %s1612_s0 = inlined_call_operand.vmem [shape: f32[2,8,64], index: 0, kind: input, shape index: {}]   ;;  %s1613_s1 = inlined_call_operand.vmem [shape: f32[1,64], index: 1, kind: input, shape index: {}]   ;;  %s1614_s2 = inlined_call_operand.vmem [shape: f32[1,64], index: 2, kind: input, shape index: {}]   ;;  %s1615_s3 = inlined_call_operand.vmem [shape: bf16[64,192], index: 3, kind: input, shape index: {}]   ;;  %s1616_s4 = inlined_call_operand.vmem [shape: bf16[2,4,8,16], index: 4, kind: output, shape index: {0}]   ;;  %s1617_s5 = inlined_call_operand.vmem [shape: bf16[2,4,16,8], index: 5, kind: output, shape index: {1}]   ;;  %s1618_s6 = inlined_call_operand.vmem [shape: bf16[2,4,8,16], index: 6, kind: output, shape index: {2}]  }
   0x1   :  { %s1364_s23 = smov 0  }
   0x2 LB: > { %s29_s24 = sadd.s32 1, %s1312_s22  ;;  %p1152_p0 = scmp.ge.s32.totalorder %s1316_s23, 1  ;;  %s1316_s23 = sphi %s1364_s23, %s17_s23   ;;  %s1312_s22 = sphi %s1362_s22, %s1620_s22   ;;  %s1308_s21 = sphi %s1360_s21, %s1619_s21  }
   0x3   : > { %p31_p1 = scmp.ge.s32.totalorder %s29_s24, 2  ;;  %p239_p2 = scmp.lt.s32.totalorder %s1316_s23, 3 }
   0x5   : > { %s1622_s24 = smov (%p31_p1, %s29_s24), 0  ;;  %p240_p3 = pnand %p1152_p0, %p239_p2 }
   0x6   : > { %p290_p4 = scmp.lt.s32.totalorder (!%p240_p3), %s1308_s21, 1  ;;  %s1320_s26 = smov (!%p240_p3), 96  }
   0x7   : > { %243 = sbr.rel (%p240_p3) target bundleno = 863 (0x35f), region = 36  ;;  %s1321_s27 = smov (!%p240_p3), 112  }
   0xc   : > { %s1624_s21 = smov (!%p290_p4, %s1308_s21), 1  ;;  %vm325_vm0 = vcmask 523264   ;;  %v1318_v2 = vmov 64.0   ;;  %v1186_v14 = vld [vmem:[%s1615_s3 + $0x30] sm:$0xf]  ;;  %vm453_vm5 = vcmask 1047556  }
   0xd   : > { %s1153_s25 = sshll.u32 %s1624_s21, 3  ;;  %1290 = vrcp.f32 %v1318_v2  ;;  %v1206_v15 = vld [vmem:[%s1615_s3 + $0x34] sm:$0xf0]  ;;  %v1205_v16 = vld [vmem:[%s1615_s3 + $0x34] sm:$0xf]  ;;  %vm816_vm6 = vcmask 125952  }
   0xe   : > { %s296_s28 = scalar_lea.vmem %s1612_s0, %s1153_s25  ;;  %v1187_v17 = vor.u32 %v1206_v15, %v1186_v14  ;;  %v1188_v18 = vld [vmem:[%s1615_s3 + $0x38] sm:$0xf0]  ;;  %v1178_v20 = vld [vmem:[%s1615_s3 + $0x20] sm:$0xf]  ;;  %v1204_v21 = vld [vmem:[%s1615_s3 + $0x24] sm:$0xf0] }
   0xf   : > { %v322_v0 = vld [vmem:[%s296_s28] sm:$0xff]  ;;  %v1191_v19 = vor.u32 %v1205_v16, %v1188_v18  ;;  %v1179_v23 = vor.u32 %v1204_v21, %v1178_v20  ;;  %v1180_v24 = vld [vmem:[%s1615_s3 + $0x28] sm:$0xf0]  ;;  %v1170_v26 = vld [vmem:[%s1615_s3 + $0x10] sm:$0xf]  ;;  %s1319_s25 = smov 80  }
  0x10   : > { %v326_v1 = vsel %vm325_vm0, %v322_v0, 0.0  ;;  %419 = vmatpush.bf16.msra.mxu0 %v1187_v17  ;;  %v1203_v22 = vld [vmem:[%s1615_s3 + $0x24] sm:$0xf]  ;;  %v1202_v27 = vld [vmem:[%s1615_s3 + $0x14] sm:$0xf0]  ;;  %s1322_s28 = smov 64  }
  0x11   : > { %327 = vadd.xlane.f32.xlu0 %v326_v1  ;;  %432 = vmatpush.bf16.msra.mxu1 %v1191_v19  ;;  %v1183_v25 = vor.u32 %v1203_v22, %v1180_v24  ;;  %v1201_v28 = vld [vmem:[%s1615_s3 + $0x14] sm:$0xf]  ;;  %v1171_v29 = vor.u32 %v1202_v27, %v1170_v26  ;;  %v1172_v30 = vld [vmem:[%s1615_s3 + $0x18] sm:$0xf0]  ;;  %v1162_v31 = vld [vmem:[%s1615_s3] sm:$0xf] }
  0x12   : > { %v1200_v32 = vld [vmem:[%s1615_s3 + $0x4] sm:$0xf0]  ;;  %v1175_v33 = vor.u32 %v1201_v28, %v1172_v30  ;;  %v1199_v34 = vld [vmem:[%s1615_s3 + $0x4] sm:$0xf]  ;;  %v1164_v35 = vld [vmem:[%s1615_s3 + $0x8] sm:$0xf0] }
  0x13   : > { %v1291_v3 = vpop.eup %1290  ;;  %v1163_v36 = vor.u32 %v1200_v32, %v1162_v31  ;;  %v1167_v37 = vor.u32 %v1199_v34, %v1164_v35  ;;  %v1288_v47 = vld [vmem:[%s1613_s1] ss:$0 sm:$0xff]  ;;  %v1324_v22 = vmov 1934713408   ;;  %s1196_s29 = sshll.u32 %s1624_s21, 4  ;;  %s1197_s12 = sshll.u32 %s1624_s21, 5 }
  0x14   : > { %v330_v4 = vmul.f32 64.0, %v1291_v3  ;;  %vm334_vm1 = vweird.f32 %v1291_v3  ;;  %420 = vmatpush.bf16.msra.mxu0 %v1179_v23  ;;  %v1289_v50 = vld [vmem:[%s1614_s2] ss:$0 sm:$0xff]  ;;  %v482_v23 = vunpack.c.l.s4 %v1324_v22  ;;  %s304_s8 = scalar_lea.vmem %s1616_s4, %s1196_s29  ;;  %s320_s11 = scalar_lea.vmem %s1618_s6, %s1196_s29  ;;  %vm957_vm7 = vcmask 60416  }
  0x15   : > { %433 = vmatpush.bf16.msra.mxu1 %v1183_v25  ;;  %s312_s15 = scalar_lea.vmem %s1617_s5, %s1197_s12 }
  0x16   : > { %v331_v5 = vsub.f32 1.0, %v330_v4  ;;  %v1323_v4 = vmov 1983009808   ;;  %v1452_v35 = vunpack.c.0.s8 %v482_v23 }
  0x18   : > { %v332_v6 = vmul.f32 %v1291_v3, %v331_v5  ;;  %421 = vmatpush.bf16.msra.mxu0 %v1171_v29  ;;  %v458_v5 = vunpack.c.l.s4 %v1323_v4 }
  0x19   : > { %434 = vmatpush.bf16.msra.mxu1 %v1175_v33 }
  0x1a   : > { %v333_v7 = vadd.f32 %v1291_v3, %v332_v6 }
  0x1c   : > { %v335_v8 = vsel %vm334_vm1, %v1291_v3, %v333_v7  ;;  %422 = vmatpush.bf16.msra.mxu0 %v1163_v36 }
  0x1d   : > { %435 = vmatpush.bf16.msra.mxu1 %v1167_v37 }
  0x84   : > { %v328_v9 = vpop.xlane.xlu0 %327 }
  0x85   : > { %v336_v10 = vmul.f32 %v335_v8, %v328_v9 }
  0x87   : > { %v337_v11 = vsub.f32 %v322_v0, %v336_v10 }
  0x89   : > { %v338_v12 = vmul.f32 %v337_v11, %v337_v11 }
  0x8b   : > { %v339_v13 = vsel %vm325_vm0, %v338_v12, 0.0 }
  0x8c   : > { %340 = vadd.xlane.f32.xlu0 %v339_v13 }
  0xff   : > { %v341_v38 = vpop.xlane.xlu0 %340 }
 0x100   : > { %v342_v39 = vmul.f32 %v341_v38, %v335_v8 }
 0x102   : > { %v343_v40 = vadd.f32 1e-05, %v342_v39 }
 0x104   : > { %1292 = vrsqrt.f32 %v343_v40  ;;  %vm350_vm3 = vweird.f32 %v343_v40 }
 0x10a   : > { %v1293_v41 = vpop.eup %1292 }
 0x10b   : > { %v345_v42 = vmul.f32 %v1293_v41, %v343_v40  ;;  %vm351_vm2 = vweird.f32 %v1293_v41 }
 0x10c   : > { %vm352_vm4 = vmor %vm350_vm3, %vm351_vm2 }
 0x10d   : > { %v346_v43 = vmul.f32 %v1293_v41, %v345_v42 }
 0x10f   : > { %v347_v44 = vmul.f32 0.5, %v346_v43 }
 0x111   : > { %v348_v45 = vsub.f32 1.5, %v347_v44 }
 0x113   : > { %v349_v46 = vmul.f32 %v1293_v41, %v348_v45 }
 0x115   : > { %v353_v48 = vsel %vm352_vm4, %v1293_v41, %v349_v46 }
 0x116   : > { %v354_v49 = vmul.f32 %v353_v48, %v337_v11  ;;  %v1442_v11 = vunpack.c.0.s8 %v458_v5 }
 0x118   : > { %v358_v51 = vmul.f32 %v1288_v47, %v354_v49 }
 0x11a   : > { %v362_v52 = vadd.f32 %v1289_v50, %v358_v51 }
 0x11c   : > { %v363_v53 = vpack.c.bf16 %v362_v52, %v362_v52 }
 0x11e   : > { %1192 = vmatmul.msk.bf16.vlgmr.msra.gmra.mxu0 %vm325_vm0, %v363_v53  ;;  %1193 = vmatmul.msk.bf16.vlgmr.msra.gmra.mxu1 %vm325_vm0, %v363_v53 }
 0x19b   : > { %v424_v54 = vpop.f32.mrf.mxu0  ;;  %v437_v55 = vpop.f32.mrf.mxu1 }
 0x19c   : > { %514 = vrot.lane.b32.xlu2 %v424_v54, %s1319_s25  ;;  %512 = vrot.lane.b32.xlu1 %v424_v54, %s1320_s26  ;;  %v441_v58 = vmul.f32 0.25, %v424_v54  ;;  %v596_v7 = vrot.slane %v437_v55, 4 }
 0x19e   : > { %v1249_v59 = vpack.i.bf16 %v437_v55, %v441_v58  ;;  %v455_v12 = vrot.slane %v441_v58, 4 }
 0x1a3   : > { %v426_v56 = vpop.f32.mrf.mxu0  ;;  %v439_v57 = vpop.f32.mrf.mxu1 }
 0x1a4   : > { %510 = vrot.lane.b32.xlu1 %v424_v54, %s1321_s27 }
 0x1ac   : > { %1250 = vrot.lane.b32.xlu1 %v1249_v59, %s1320_s26 }
 0x1b4   : > { %1260 = vrot.lane.b32.xlu1 %v1249_v59, %s1319_s25 }
 0x1f6   : > { %v515_v62 = vpop.permute.xlu2 %514 }
 0x20e   : > { %v513_v60 = vpop.permute.xlu1 %512 }
 0x20f   : > { %v1239_v61 = vpack.i.bf16 %v513_v60, %v424_v54 }
 0x211   : > { %1240 = vrot.lane.b32.xlu2 %v1239_v61, %s1322_s28 }
 0x216   : > { %v511_v63 = vpop.permute.xlu1 %510 }
 0x217   : > { %v1244_v0 = vpack.i.bf16 %v515_v62, %v511_v63 }
 0x219   : > { %1245 = vrot.lane.b32.xlu0 %v1244_v0, %s1322_s28  ;;  %1255 = vrot.lane.b32.xlu2 %v1249_v59, %s1321_s27 }
 0x21e   : > { %v1251_v1 = vpop.permute.xlu1 %1250 }
 0x21f   : > { %v1253_v2 = vunpack.i.h.bf16 %v1251_v1  ;;  %v1252_v3 = vunpack.i.l.bf16 %v1251_v1 }
 0x221   : > { %v594_v8 = vrot.slane %v1253_v2, 4  ;;  %v452_v9 = vrot.slane %v1252_v3, 4  ;;  %v597_v13 = vsel %vm453_vm5, %v1253_v2, %v596_v7  ;;  %v456_v14 = vsel %vm453_vm5, %v1252_v3, %v455_v12 }
 0x222   : > { %v605_v20 = vperm.slane %v597_v13, %v1442_v11  ;;  %v464_v26 = vperm.slane %v456_v14, %v1442_v11 }
 0x223   : > { %v595_v16 = vsel %vm453_vm5, %v594_v8, %v437_v55  ;;  %v454_v17 = vsel %vm453_vm5, %v452_v9, %v441_v58 }
 0x224   : > { %v601_v24 = vperm.slane %v595_v16, %v1442_v11  ;;  %v460_v25 = vperm.slane %v454_v17, %v1442_v11  ;;  %v632_v33 = vrot.slane %v605_v20, 4  ;;  %v491_v41 = vrot.slane %v464_v26, 4 }
 0x226   : > { %v1261_v10 = vpop.permute.xlu1 %1260  ;;  %v479_v40 = vrot.slane %v460_v25, 4  ;;  %v620_v44 = vrot.slane %v601_v24, 4 }
 0x227   : > { %v1263_v15 = vunpack.i.h.bf16 %v1261_v10  ;;  %v1262_v18 = vunpack.i.l.bf16 %v1261_v10 }
 0x229   : > { %v606_v27 = vrot.slane %v1263_v15, 4  ;;  %v465_v29 = vrot.slane %v1262_v18, 4 }
 0x26b   : > { %v1241_v6 = vpop.permute.xlu2 %1240 }
 0x26c   : > { %v1243_v19 = vunpack.i.h.bf16 %v1241_v6  ;;  %v1242_v21 = vunpack.i.l.bf16 %v1241_v6 }
 0x26e   : > { %v528_v30 = vrot.slane %v1243_v19, 4  ;;  %v530_v34 = vrot.slane %v1242_v21, 4 }
 0x270   : > { %v1459_v45 = vsel %vm453_vm5, %v528_v30, %v1242_v21  ;;  %v1467_v52 = vsel %vm453_vm5, %v1243_v19, %v530_v34 }
 0x273   : > { %v1256_v28 = vpop.permute.xlu2 %1255 }
 0x274   : > { %v1258_v31 = vunpack.i.h.bf16 %v1256_v28  ;;  %v1257_v32 = vunpack.i.l.bf16 %v1256_v28 }
 0x276   : > { %v608_v36 = vrot.slane %v1258_v31, 4  ;;  %v466_v37 = vsel %vm453_vm5, %v465_v29, %v1257_v32  ;;  %v467_v38 = vrot.slane %v1257_v32, 4  ;;  %v607_v39 = vsel %vm453_vm5, %v606_v27, %v1258_v31 }
 0x277   : > { %v472_v42 = vperm.slane %v466_v37, %v1442_v11  ;;  %v613_v43 = vperm.slane %v607_v39, %v1442_v11 }
 0x278   : > { %v468_v46 = vsel %vm453_vm5, %v1262_v18, %v467_v38  ;;  %v609_v47 = vsel %vm453_vm5, %v1263_v15, %v608_v36 }
 0x279   : > { %v476_v48 = vperm.slane %v468_v46, %v1442_v11  ;;  %v477_v49 = vrot.slane %v472_v42, 4  ;;  %v480_v50 = vsel %vm453_vm5, %v472_v42, %v479_v40  ;;  %v617_v51 = vperm.slane %v609_v47, %v1442_v11 }
 0x27a   : > { %v488_v53 = vperm.slane %v480_v50, %v1452_v35  ;;  %v618_v54 = vrot.slane %v613_v43, 4  ;;  %v621_v55 = vsel %vm453_vm5, %v613_v43, %v620_v44 }
 0x27b   : > { %v478_v56 = vsel %vm453_vm5, %v477_v49, %v460_v25  ;;  %v489_v57 = vrot.slane %v476_v48, 4  ;;  %v492_v58 = vsel %vm453_vm5, %v476_v48, %v491_v41  ;;  %v629_v59 = vperm.slane %v621_v55, %v1452_v35 }
 0x27c   : > { %v484_v60 = vperm.slane %v478_v56, %v1452_v35  ;;  %v500_v61 = vperm.slane %v492_v58, %v1452_v35  ;;  %v503_v62 = vrot.slane %v488_v53, 4  ;;  %v619_v63 = vsel %vm453_vm5, %v618_v54, %v601_v24 }
 0x27d   : > { %v490_v0 = vsel %vm453_vm5, %v489_v57, %v464_v26  ;;  %v625_v1 = vperm.slane %v619_v63, %v1452_v35  ;;  %v630_v2 = vrot.slane %v617_v51, 4  ;;  %v633_v3 = vsel %vm453_vm5, %v617_v51, %v632_v33 }
 0x27e   : > { %v496_v4 = vperm.slane %v490_v0, %v1452_v35  ;;  %v501_v5 = vrot.slane %v484_v60, 4  ;;  %v504_v6 = vsel %vm453_vm5, 0.0, %v503_v62  ;;  %v507_v7 = vrot.slane %v500_v61, 4 }
 0x27f   : > { %v631_v8 = vsel %vm453_vm5, %v630_v2, %v605_v20  ;;  %v641_v9 = vperm.slane %v633_v3, %v1452_v35  ;;  %v642_v10 = vrot.slane %v625_v1, 4  ;;  %v644_v12 = vrot.slane %v629_v59, 4 }
 0x280   : > { %v502_v13 = vsel %vm453_vm5, 0.0, %v501_v5  ;;  %v505_v14 = vrot.slane %v496_v4, 4  ;;  %v508_v15 = vsel %vm453_vm5, 0.0, %v507_v7  ;;  %v637_v16 = vperm.slane %v631_v8, %v1452_v35 }
 0x281   : > { %v643_v17 = vsel %vm453_vm5, 0.0, %v642_v10  ;;  %v645_v18 = vsel %vm453_vm5, 0.0, %v644_v12  ;;  %v648_v19 = vrot.slane %v641_v9, 4  ;;  %v650_v21 = vsel %vm453_vm5, %v503_v62, %v484_v60 }
 0x282   : > { %v506_v20 = vsel %vm453_vm5, 0.0, %v505_v14  ;;  %v646_v22 = vrot.slane %v637_v16, 4  ;;  %v654_v23 = vperm.slane %v650_v21, %v1442_v11  ;;  %v655_v24 = vrot.slane %v504_v6, 4 }
 0x283   : > { %v649_v25 = vsel %vm453_vm5, 0.0, %v648_v19  ;;  %v661_v26 = vsel %vm453_vm5, %v507_v7, %v496_v4  ;;  %v666_v27 = vrot.slane %v508_v15, 4  ;;  %v758_v28 = vsel %vm453_vm5, %v644_v12, %v625_v1 }
 0x284   : > { %v647_v29 = vsel %vm453_vm5, 0.0, %v646_v22  ;;  %v656_v30 = vsel %vm453_vm5, %v655_v24, %v502_v13  ;;  %v665_v31 = vperm.slane %v661_v26, %v1442_v11  ;;  %v674_v32 = vrot.slane %v654_v23, 4 }
 0x285   : > { %v660_v33 = vperm.slane %v656_v30, %v1442_v11  ;;  %v667_v34 = vsel %vm453_vm5, %v666_v27, %v506_v20  ;;  %v762_v36 = vperm.slane %v758_v28, %v1442_v11  ;;  %v763_v37 = vrot.slane %v645_v18, 4 }
 0x286   : > { %v671_v38 = vperm.slane %v667_v34, %v1442_v11  ;;  %v686_v39 = vrot.slane %v665_v31, 4  ;;  %v769_v40 = vsel %vm453_vm5, %v648_v19, %v637_v16  ;;  %v774_v41 = vrot.slane %v649_v25, 4 }
 0x287   : > { %v672_v42 = vrot.slane %v660_v33, 4  ;;  %v675_v43 = vsel %vm453_vm5, %v660_v33, %v674_v32  ;;  %v764_v44 = vsel %vm453_vm5, %v763_v37, %v643_v17  ;;  %v773_v46 = vperm.slane %v769_v40, %v1442_v11 }
 0x288   : > { %v683_v47 = vperm.slane %v675_v43, %v1452_v35  ;;  %v684_v48 = vrot.slane %v671_v38, 4  ;;  %v687_v49 = vsel %vm453_vm5, %v671_v38, %v686_v39  ;;  %v768_v50 = vperm.slane %v764_v44, %v1442_v11 }
 0x289   : > { %v673_v51 = vsel %vm453_vm5, %v672_v42, %v654_v23  ;;  %v695_v53 = vperm.slane %v687_v49, %v1452_v35  ;;  %v775_v54 = vsel %vm453_vm5, %v774_v41, %v647_v29  ;;  %v782_v55 = vrot.slane %v762_v36, 4 }
 0x28a   : > { %v679_v56 = vperm.slane %v673_v51, %v1452_v35  ;;  %v685_v57 = vsel %vm453_vm5, %v684_v48, %v665_v31  ;;  %v702_v58 = vrot.slane %v683_v47, 4  ;;  %v779_v59 = vperm.slane %v775_v54, %v1442_v11 }
 0x28b   : > { %v691_v60 = vperm.slane %v685_v57, %v1452_v35  ;;  %v700_v61 = vrot.slane %v695_v53, 4  ;;  %v780_v62 = vrot.slane %v768_v50, 4  ;;  %v783_v63 = vsel %vm453_vm5, %v768_v50, %v782_v55  ;;  %v1246_v13 = vpop.permute.xlu0 %1245 }
 0x28c   : > { %v698_v0 = vrot.slane %v679_v56, 4  ;;  %v703_v1 = vsel %vm453_vm5, %v695_v53, %v702_v58  ;;  %v791_v2 = vperm.slane %v783_v63, %v1452_v35  ;;  %v792_v3 = vrot.slane %v779_v59, 4 }
 0x28d   : > { %v696_v4 = vrot.slane %v691_v60, 4  ;;  %v701_v5 = vsel %vm453_vm5, %v700_v61, %v683_v47  ;;  %v781_v6 = vsel %vm453_vm5, %v780_v62, %v762_v36  ;;  %v794_v7 = vrot.slane %v773_v46, 4 }
 0x28e   : > { %v699_v8 = vsel %vm453_vm5, %v691_v60, %v698_v0  ;;  %v787_v9 = vperm.slane %v781_v6, %v1452_v35  ;;  %v793_v10 = vsel %vm453_vm5, %v792_v3, %v773_v46  ;;  %v810_v12 = vrot.slane %v791_v2, 4 }
 0x28f   : > { %v697_v14 = vsel %vm453_vm5, %v696_v4, %v679_v56  ;;  %v795_v15 = vsel %vm453_vm5, %v779_v59, %v794_v7  ;;  %v799_v16 = vperm.slane %v793_v10, %v1452_v35  ;;  %v813_v17 = vpack.c.bf16 %v699_v8, %v699_v8 }
 0x290   : > { %v803_v18 = vperm.slane %v795_v15, %v1452_v35  ;;  %v806_v19 = vrot.slane %v787_v9, 4  ;;  %v812_v21 = vpack.c.bf16 %v697_v14, %v697_v14  ;;  %v814_v20 = vpack.c.bf16 %v701_v5, %v701_v5 }
 0x291   : > { %v804_v22 = vrot.slane %v799_v16, 4  ;;  %v815_v23 = vpack.c.bf16 %v703_v1, %v703_v1  ;;  %818 = vst.msk [vmem:[%s304_s8 + $0x4] sm:$0xf] %vm816_vm6, %v813_v17  ;;  %v1248_v24 = vunpack.i.h.bf16 %v1246_v13  ;;  %v1247_v25 = vunpack.i.l.bf16 %v1246_v13 }
 0x292   : > { %v535_v26 = vperm.slane %v1459_v45, %v1442_v11  ;;  %v807_v27 = vsel %vm453_vm5, %v799_v16, %v806_v19  ;;  %v808_v28 = vrot.slane %v803_v18, 4  ;;  %v811_v29 = vsel %vm453_vm5, %v803_v18, %v810_v12  ;;  %817 = vst.msk [vmem:[%s304_s8] sm:$0xf] %vm816_vm6, %v812_v21 }
 0x293   : > { %v539_v30 = vperm.slane %v1467_v52, %v1442_v11  ;;  %v805_v31 = vsel %vm453_vm5, %v804_v22, %v787_v9  ;;  %819 = vst.msk [vmem:[%s304_s8 + $0x8] sm:$0xf] %vm816_vm6, %v814_v20  ;;  %v967_v32 = vpack.c.bf16 %v807_v27, %v807_v27  ;;  %v540_v33 = vrot.slane %v1248_v24, 4 }
 0x294   : > { %v809_v45 = vsel %vm453_vm5, %v808_v28, %v791_v2  ;;  %820 = vst.msk [vmem:[%s304_s8 + $0xc] sm:$0xf] %vm816_vm6, %v815_v23  ;;  %v966_v34 = vpack.c.bf16 %v805_v31, %v805_v31  ;;  %v969_v36 = vpack.c.bf16 %v811_v29, %v811_v29  ;;  %v542_v37 = vrot.slane %v1247_v25, 4 }
 0x295   : > { %v968_v38 = vpack.c.bf16 %v809_v45, %v809_v45  ;;  %971 = vst.msk [vmem:[%s320_s11 + $0x4] sm:$0xf] %vm816_vm6, %v967_v32  ;;  %v541_v52 = vsel %vm453_vm5, %v540_v33, %v1247_v25  ;;  %v554_v39 = vrot.slane %v535_v26, 4  ;;  %v566_v42 = vrot.slane %v539_v30, 4 }
 0x296   : > { %970 = vst.msk [vmem:[%s320_s11] sm:$0xf] %vm816_vm6, %v966_v34  ;;  %v543_v40 = vsel %vm453_vm5, %v1248_v24, %v542_v37  ;;  %v547_v41 = vperm.slane %v541_v52, %v1442_v11 }
 0x297   : > { %972 = vst.msk [vmem:[%s320_s11 + $0x8] sm:$0xf] %vm816_vm6, %v968_v38  ;;  %v551_v43 = vperm.slane %v543_v40, %v1442_v11 }
 0x298   : > { %973 = vst.msk [vmem:[%s320_s11 + $0xc] sm:$0xf] %vm816_vm6, %v969_v36  ;;  %v552_v44 = vrot.slane %v547_v41, 4  ;;  %v555_v46 = vsel %vm453_vm5, %v547_v41, %v554_v39 }
 0x299   : > { %v563_v47 = vperm.slane %v555_v46, %v1452_v35  ;;  %v564_v48 = vrot.slane %v551_v43, 4  ;;  %v567_v49 = vsel %vm453_vm5, %v551_v43, %v566_v42 }
 0x29a   : > { %v553_v50 = vsel %vm453_vm5, %v552_v44, %v535_v26  ;;  %v575_v51 = vperm.slane %v567_v49, %v1452_v35 }
 0x29b   : > { %v559_v53 = vperm.slane %v553_v50, %v1452_v35  ;;  %v565_v54 = vsel %vm453_vm5, %v564_v48, %v539_v30  ;;  %v578_v55 = vrot.slane %v563_v47, 4 }
 0x29c   : > { %v571_v56 = vperm.slane %v565_v54, %v1452_v35  ;;  %v582_v57 = vrot.slane %v575_v51, 4 }
 0x29d   : > { %v576_v58 = vrot.slane %v559_v53, 4  ;;  %v579_v59 = vsel %vm453_vm5, 0.0, %v578_v55  ;;  %v704_v60 = vsel %vm453_vm5, %v578_v55, %v559_v53 }
 0x29e   : > { %v580_v61 = vrot.slane %v571_v56, 4  ;;  %v583_v62 = vsel %vm453_vm5, 0.0, %v582_v57  ;;  %v709_v63 = vrot.slane %v579_v59, 4  ;;  %v708_v0 = vperm.slane %v704_v60, %v1442_v11 }
 0x29f   : > { %v720_v1 = vrot.slane %v583_v62, 4  ;;  %v577_v2 = vsel %vm453_vm5, 0.0, %v576_v58  ;;  %v715_v3 = vsel %vm453_vm5, %v582_v57, %v571_v56 }
 0x2a0   : > { %v581_v4 = vsel %vm453_vm5, 0.0, %v580_v61  ;;  %v710_v5 = vsel %vm453_vm5, %v709_v63, %v577_v2  ;;  %v719_v6 = vperm.slane %v715_v3, %v1442_v11  ;;  %v728_v7 = vrot.slane %v708_v0, 4 }
 0x2a1   : > { %v714_v8 = vperm.slane %v710_v5, %v1442_v11  ;;  %v721_v9 = vsel %vm453_vm5, %v720_v1, %v581_v4 }
 0x2a2   : > { %v725_v10 = vperm.slane %v721_v9, %v1442_v11  ;;  %v740_v12 = vrot.slane %v719_v6, 4 }
 0x2a3   : > { %v729_v13 = vsel %vm453_vm5, %v714_v8, %v728_v7  ;;  %v726_v14 = vrot.slane %v714_v8, 4 }
 0x2a4   : > { %v737_v15 = vperm.slane %v729_v13, %v1452_v35  ;;  %v741_v16 = vsel %vm453_vm5, %v725_v10, %v740_v12  ;;  %v738_v17 = vrot.slane %v725_v10, 4 }
 0x2a5   : > { %v749_v18 = vperm.slane %v741_v16, %v1452_v35  ;;  %v727_v19 = vsel %vm453_vm5, %v726_v14, %v708_v0 }
 0x2a6   : > { %v756_v21 = vrot.slane %v737_v15, 4  ;;  %v733_v20 = vperm.slane %v727_v19, %v1452_v35  ;;  %v739_v22 = vsel %vm453_vm5, %v738_v17, %v719_v6 }
 0x2a7   : > { %v754_v11 = vrot.slane %v749_v18, 4  ;;  %v745_v23 = vperm.slane %v739_v22, %v1452_v35 }
 0x2a8   : > { %v757_v24 = vsel %vm453_vm5, %v749_v18, %v756_v21  ;;  %v752_v25 = vrot.slane %v733_v20, 4 }
 0x2a9   : > { %v755_v26 = vsel %vm453_vm5, %v754_v11, %v737_v15  ;;  %v750_v27 = vrot.slane %v745_v23, 4 }
 0x2aa   : > { %v1276_v28 = vpack.i.bf16 %v757_v24, %v755_v26  ;;  %v753_v29 = vsel %vm453_vm5, %v745_v23, %v752_v25 }
 0x2ab   : > { %v751_v30 = vsel %vm453_vm5, %v750_v27, %v733_v20 }
 0x2ac   : > { %1277 = vxpose.xlu1.b32.start.end [1/1] (short) (narrow) %v1276_v28, 16  ;;  %v1264_v31 = vpack.i.bf16 %v753_v29, %v751_v30 }
 0x2ae   : > { %1265 = vxpose.xlu2.b32.start.end [1/1] (short) (narrow) %v1264_v31, 16 }
 0x347   : > { %v1266_v32 = vpop.trf.xlu2 }
 0x348   : > { %v1270_v33 = vunpack.i.h.bf16 %v1266_v32  ;;  %v1267_v45 = vunpack.i.l.bf16 %v1266_v32 }
 0x34a   : > { %v951_v35 = vpack.c.bf16 %v1270_v33, %v1270_v33  ;;  %v949_v34 = vpack.c.bf16 %v1267_v45, %v1267_v45 }
 0x34c   : > { %960 = vst.msk [vmem:[%s312_s15 + $0x8] sm:$0xf] %vm957_vm7, %v951_v35 }
 0x34d   : > { %958 = vst.msk [vmem:[%s312_s15] sm:$0xf] %vm957_vm7, %v949_v34 }
 0x34f   : > { %v1271_v36 = vpop.trf.xlu2 }
 0x350   : > { %v1278_v37 = vpop.trf.xlu1  ;;  %v1275_v38 = vunpack.i.h.bf16 %v1271_v36  ;;  %v1272_v52 = vunpack.i.l.bf16 %v1271_v36 }
 0x351   : > { %v1282_v39 = vunpack.i.h.bf16 %v1278_v37  ;;  %v1279_v40 = vunpack.i.l.bf16 %v1278_v37 }
 0x352   : > { %v952_v41 = vpack.c.bf16 %v1275_v38, %v1275_v38  ;;  %v950_v44 = vpack.c.bf16 %v1272_v52, %v1272_v52 }
 0x353   : > { %v955_v42 = vpack.c.bf16 %v1282_v39, %v1282_v39  ;;  %v953_v43 = vpack.c.bf16 %v1279_v40, %v1279_v40 }
 0x354   : > { %961 = vst.msk [vmem:[%s312_s15 + $0xc] sm:$0xf] %vm957_vm7, %v952_v41 }
 0x355   : > { %964 = vst.msk [vmem:[%s312_s15 + $0x18] sm:$0xf] %vm957_vm7, %v955_v42 }
 0x356   : > { %962 = vst.msk [vmem:[%s312_s15 + $0x10] sm:$0xf] %vm957_vm7, %v953_v43 }
 0x357   : > { %959 = vst.msk [vmem:[%s312_s15 + $0x4] sm:$0xf] %vm957_vm7, %v950_v44 }
 0x358   : > { %v1283_v46 = vpop.trf.xlu1 }
 0x359   : > { %v1287_v47 = vunpack.i.h.bf16 %v1283_v46  ;;  %v1284_v48 = vunpack.i.l.bf16 %v1283_v46 }
 0x35b   : > { %v956_v49 = vpack.c.bf16 %v1287_v47, %v1287_v47  ;;  %v954_v50 = vpack.c.bf16 %v1284_v48, %v1284_v48 }
 0x35d   : > { %965 = vst.msk [vmem:[%s312_s15 + $0x1c] sm:$0xf] %vm957_vm7, %v956_v49 }
 0x35e   : > { %963 = vst.msk [vmem:[%s312_s15 + $0x14] sm:$0xf] %vm957_vm7, %v954_v50 }
 0x35f PF: > { %s17_s23 = sadd.s32 1, %s1316_s23   ;;  %s1619_s21 = smov %s1312_s22 }
 0x360   : > { %p14_p5 = scmp.ge.s32.totalorder %s17_s23, 4   ;;  %s1620_s22 = smov %s1622_s24 }
 0x362   :  { %16 = sbr.rel (!%p14_p5) target bundleno = 2 (0x2), region = 90 }

// kernel: gpt_forward.13
= control target key start
LH: loop header
LB: loop body
LE: loop exit
PB: predicated region body
PF: predicated region fallthrough
CT: control target
= control target key end

     0   :  { %9 = vsyncpa [#allocation4], 0  ;;  %s771_s0 = inlined_call_operand.vmem [shape: f32[2,8,64], index: 0, kind: input, shape index: {}]   ;;  %s772_s1 = inlined_call_operand.vmem [shape: f32[1,64], index: 1, kind: input, shape index: {}]   ;;  %s773_s2 = inlined_call_operand.vmem [shape: f32[1,64], index: 2, kind: input, shape index: {}]   ;;  %s774_s3 = inlined_call_operand.vmem [shape: bf16[64,128], index: 3, kind: input, shape index: {}]   ;;  %s775_s4 = inlined_call_operand.hbm [shape: f32[2,8,128], index: 4, kind: output, shape index: {}]  }
   0x1   :  { %11 = vsyncpa [#allocation4 + $0x1], 0  ;;  %s653_s15 = smov 0   ;;  %s655_s16 = smov 0  }
   0x2   :  { %s657_s17 = smov 0   ;;  %s659_s18 = smov 0  }
   0x3   :  { %s661_s19 = smov 0   ;;  %s663_s20 = smov 0  }
   0x4 LB: > { %s452_s21 = sadd.s32 4294967295, %s625_s20   ;;  %s453_s22 = sadd.s32 4294967294, %s625_s20   ;;  %s625_s20 = sphi %s663_s20, %s17_s20   ;;  %s621_s19 = sphi %s661_s19, %s782_s19   ;;  %s617_s18 = sphi %s659_s18, %s781_s18   ;;  %s613_s17 = sphi %s657_s17, %s780_s17   ;;  %s609_s16 = sphi %s655_s16, %s779_s16   ;;  %s605_s15 = sphi %s653_s15, %s778_s15  }
   0x5   : > { %s36_s23 = sadd.s32 1, %s621_s19  ;;  %s143_s24 = sadd.s32 1, %s613_s17 }
   0x6   : > { %p38_p0 = scmp.ge.s32.totalorder %s36_s23, 2  ;;  %p153_p1 = scmp.ne.s32.totalorder %s613_s17, %s609_s16 }
   0x7   : > { %p154_p2 = scmp.eq.s32.totalorder %s452_s21, 1  ;;  %p159_p3 = scmp.ne.s32.totalorder %s609_s16, %s605_s15 }
   0x8   : > { %s784_s23 = smov (%p38_p0, %s36_s23), 0  ;;  %p160_p5 = scmp.eq.s32.totalorder %s453_s22, 1 }
   0x9   : > { %p693_p4 = por %p154_p2, %p153_p1  ;;  %s136_s26 = ssub.s32 %s621_s19, %s784_s23 }
   0xa   : > { %p457_p6 = scmp.ge.s32.totalorder %s625_s20, 1  ;;  %p141_p7 = scmp.eq.s32.totalorder %s136_s26, 0 }
   0xb   : > { %p700_p8 = por %p160_p5, %p159_p3  ;;  %p201_p9 = scmp.lt.s32.totalorder %s625_s20, 3 }
   0xc   : > { %s706_s28 = scalar_select %p141_p7, %s613_s17, %s143_s24  }
   0xd   : > { %p202_p10 = pnand %p457_p6, %p201_p9 }
   0xe   : > { %p233_p11 = scmp.lt.s32.totalorder (!%p202_p10), %s617_s18, 1  ;;  %s478_s5 = sshll.u32 (!%p202_p10), %s617_s18, 3 }
   0xf   : > { %205 = sbr.rel (%p202_p10) target bundleno = 437 (0x1b5), region = 36  ;;  %s357_s9 = scalar_lea.hbm (!%p202_p10), %s775_s4, %s478_s5 }
  0x10   : > { %s361_s12 = sshll.u32 (!%p202_p10), %s357_s9, 4  ;;  %s567_s24 = scalar_lea.hbm (!%p202_p10), %s775_s4, 16  ;;  %s362_s12 = int_to_ptr.hbm [resolvable:$true] %s361_s12 }
  0x11   : > { %s561_s14 = sshra.s32 (!%p202_p10), %s362_s12, 4  ;;  %s562_s14 = int_to_ptr.hbm [resolvable:$true] %s561_s14 }
  0x12   : > { %s563_s21 = scalar_lea.hbm (!%p202_p10), %s562_s14, 8  ;;  %p568_p1 = scmp.lt.s32.totalorder (!%p202_p10), %s562_s14, %s775_s4 }
  0x13   : > { %p564_p12 = scmp.ne.s32.totalorder (!%p202_p10), %s562_s14, %s563_s21  ;;  %p569_p2 = scmp.lt.s32.totalorder (!%p202_p10), %s567_s24, %s563_s21 }
  0x14   : > { %s234_s29 = scalar_select %p233_p11, %s617_s18, 1  ;;  %vm252_vm0 = vcmask 523264   ;;  %v627_v2 = vmov 64.0   ;;  %v484_v14 = vld [vmem:[%s774_s3 + $0x18] sm:$0xff]  ;;  %v483_v15 = vld [vmem:[%s774_s3 + $0x10] sm:$0xff]  ;;  %v482_v16 = vld [vmem:[%s774_s3 + $0x8] sm:$0xff] }
  0x15   : > { %543 = vrcp.f32 %v627_v2  ;;  %334 = vmatpush.bf16.msra.mxu0 %v484_v14  ;;  %v481_v18 = vld [vmem:[%s774_s3] sm:$0xff]  ;;  %vm291_vm5 = vcmask 519168   ;;  %p565_p13 = pnand %p564_p12, %p693_p4  ;;  %p570_p3 = por %p569_p2, %p568_p1 }
  0x16   : > { %s459_s30 = sshll.u32 %s234_s29, 3  ;;  %v541_v27 = vld [vmem:[%s772_s1] ss:$0 sm:$0xff] }
  0x17   : > { %s239_s7 = scalar_lea.vmem %s771_s0, %s459_s30  ;;  %v542_v29 = vld [vmem:[%s773_s2] ss:$0 sm:$0xff]  ;;  %s230_s30 = sand.u32 1, %s609_s16  }
  0x18   : > { %v249_v0 = vld [vmem:[%s239_s7] sm:$0xff]  ;;  %s458_s6 = sshll.u32 %s230_s30, 3  ;;  %s345_s13 = scalar_lea.sflag [#allocation4], %s230_s30 }
  0x19   : > { %v253_v1 = vsel %vm252_vm0, %v249_v0, 0.0  ;;  %335 = vmatpush.bf16.msra.mxu0 %v483_v15  ;;  %s232_s10 = scalar_lea.vmem [#allocation3], %s458_s6  ;;  %p566_p0 = pneg %p565_p13 }
  0x1a   : > { %254 = vadd.xlane.f32.xlu0 %v253_v1  ;;  %s359_s11 = sshll.u32 %s232_s10, 4  ;;  %s360_s11 = int_to_ptr.vmem [resolvable:$true] %s359_s11 }
  0x1b   : > { %v544_v3 = vpop.eup %543  ;;  %p571_p5 = pnand %p570_p3, %p566_p0 }
  0x1c   : > { %v257_v4 = vmul.f32 64.0, %v544_v3  ;;  %vm261_vm1 = vweird.f32 %v544_v3 }
  0x1d   : > { %336 = vmatpush.bf16.msra.mxu0 %v482_v16 }
  0x1e   : > { %v258_v5 = vsub.f32 1.0, %v257_v4 }
  0x20   : > { %v259_v6 = vmul.f32 %v544_v3, %v258_v5 }
  0x21   : > { %337 = vmatpush.bf16.msra.mxu0 %v481_v18 }
  0x22   : > { %v260_v7 = vadd.f32 %v544_v3, %v259_v6 }
  0x24   : > { %v262_v8 = vsel %vm261_vm1, %v544_v3, %v260_v7 }
  0x8d   : > { %v255_v9 = vpop.xlane.xlu0 %254 }
  0x8e   : > { %v263_v10 = vmul.f32 %v262_v8, %v255_v9 }
  0x90   : > { %v264_v11 = vsub.f32 %v249_v0, %v263_v10 }
  0x92   : > { %v265_v12 = vmul.f32 %v264_v11, %v264_v11 }
  0x94   : > { %v266_v13 = vsel %vm252_vm0, %v265_v12, 0.0 }
  0x95   : > { %267 = vadd.xlane.f32.xlu0 %v266_v13 }
 0x108   : > { %v268_v17 = vpop.xlane.xlu0 %267 }
 0x109   : > { %v269_v19 = vmul.f32 %v268_v17, %v262_v8 }
 0x10b   : > { %v270_v20 = vadd.f32 1e-05, %v269_v19 }
 0x10d   : > { %545 = vrsqrt.f32 %v270_v20  ;;  %vm277_vm3 = vweird.f32 %v270_v20 }
 0x113   : > { %v546_v21 = vpop.eup %545 }
 0x114   : > { %v272_v22 = vmul.f32 %v546_v21, %v270_v20  ;;  %vm278_vm2 = vweird.f32 %v546_v21 }
 0x115   : > { %vm279_vm4 = vmor %vm277_vm3, %vm278_vm2 }
 0x116   : > { %v273_v23 = vmul.f32 %v546_v21, %v272_v22 }
 0x118   : > { %v274_v24 = vmul.f32 0.5, %v273_v23 }
 0x11a   : > { %v275_v25 = vsub.f32 1.5, %v274_v24 }
 0x11c   : > { %v276_v26 = vmul.f32 %v546_v21, %v275_v25 }
 0x11e   : > { %v280_v28 = vsel %vm279_vm4, %v546_v21, %v276_v26 }
 0x11f   : > { %v281_v30 = vmul.f32 %v280_v28, %v264_v11 }
 0x121   : > { %v285_v31 = vmul.f32 %v541_v27, %v281_v30 }
 0x123   : > { %v289_v32 = vadd.f32 %v542_v29, %v285_v31 }
 0x125   : > { %v290_v33 = vpack.c.bf16 %v289_v32, %v289_v32 }
 0x127   : > { %292 = vst.msk [vmem:[#allocation2] sm:$0xf] %vm291_vm5, %v290_v33 }
 0x12e   : > { %v293_v34 = vld [vmem:[#allocation2] sm:$0xf] }
 0x12f   : > { %476 = vmatmul.msk.bf16.vlgmr.msra.gmra.mxu0 %vm252_vm0, %v293_v34 }
 0x1ac   : > { %v339_v35 = vpop.f32.mrf.mxu0 }
 0x1ad   : > { %343 = vst [vmem:[%s232_s10] sm:$0xff] %v339_v35 }
 0x1ae   : > { %574 = shalt.err (!%p571_p5)
}
 0x1af   : > { %485 = dma.vmem_to_hbm [thread:$0]  (%p693_p4), %s360_s11, 128, %s362_s12, %s345_s13  }
 0x1b4   : > { %v341_v36 = vpop.f32.mrf.mxu0 }
 0x1b5 PF: > { %p491_p6 = scmp.ge.s32.totalorder %s625_s20, 2  ;;  %s373_s30 = sand.u32 1, %s605_s15  }
 0x1b6   : > { %s374_s5 = scalar_lea.sflag [#allocation4], %s373_s30 }
 0x1b7   : > { %p488_p7 = pnand %p491_p6, %p700_p8 }
 0x1b9   : > { %p489_p9 = pneg %p488_p7 }
 0x1bb   : > { %600 = dma.done.wait (%p489_p9), %s374_s5, 128  }
 0x1bc   : > { %602 = vsyncadd (%p489_p9), %s374_s5, 4294967168  ;;  %s17_s20 = sadd.s32 1, %s625_s20   ;;  %s778_s15 = smov %s609_s16 }
 0x1bd   : > { %p14_p10 = scmp.ge.s32.totalorder %s17_s20, 4   ;;  %s779_s16 = smov %s613_s17 }
 0x1be   : > { %s780_s17 = smov %s706_s28  ;;  %s781_s18 = smov %s621_s19 }
 0x1bf   : > { %s782_s19 = smov %s784_s23  ;;  %16 = sbr.rel (!%p14_p10) target bundleno = 4 (0x4), region = 78 }
 0x1c4   :  { %380 = vsyncpa [#allocation4], 1 }
 0x1c5   :  { %382 = vsyncpa [#allocation4 + $0x1], 1 }

// kernel: gpt_forward.8
= control target key start
LH: loop header
LB: loop body
LE: loop exit
PB: predicated region body
PF: predicated region fallthrough
CT: control target
= control target key end

     0   :  { %s1446_s12 = smov 0   ;;  %s1448_s13 = smov 0   ;;  %s1615_s0 = inlined_call_operand.vmem [shape: bf16[2,4,8,16], index: 0, kind: input, shape index: {}]   ;;  %s1616_s1 = inlined_call_operand.vmem [shape: bf16[2,4,16,8], index: 1, kind: input, shape index: {}]   ;;  %s1617_s2 = inlined_call_operand.vmem [shape: bf16[2,4,8,16], index: 2, kind: input, shape index: {}]   ;;  %s1618_s3 = inlined_call_operand.vmem [shape: bf16[2,8,64], index: 3, kind: output, shape index: {}]  }
   0x1   :  { %s1450_s14 = smov 0  }
   0x2 LB: > { %s32_s15 = sadd.s32 1, %s1412_s13  ;;  %p1266_p0 = scmp.ge.s32.totalorder %s1416_s14, 1  ;;  %s1416_s14 = sphi %s1450_s14, %s13_s14   ;;  %s1412_s13 = sphi %s1448_s13, %s1620_s13   ;;  %s1408_s12 = sphi %s1446_s12, %s1619_s12  }
   0x3   : > { %p34_p1 = scmp.ge.s32.totalorder %s32_s15, 2  ;;  %p209_p2 = scmp.lt.s32.totalorder %s1416_s14, 3 }
   0x5   : > { %s1622_s15 = smov (%p34_p1, %s32_s15), 0  ;;  %p210_p3 = pnand %p1266_p0, %p209_p2 }
   0x6   : > { %p258_p4 = scmp.lt.s32.totalorder (!%p210_p3), %s1408_s12, 1  ;;  %s1423_s27 = smov (!%p210_p3), 32  }
   0x7   : > { %213 = sbr.rel (%p210_p3) target bundleno = 777 (0x309), region = 32  ;;  %s1424_s28 = smov (!%p210_p3), 48  }
   0x8   : > { %s1425_s29 = smov (!%p210_p3), 16  }
   0xc   : > { %s1624_s12 = smov (!%p258_p4, %s1408_s12), 1  ;;  %vm311_vm0 = vcmask 130048   ;;  %vm302_vm1 = vcmask 7168   ;;  %v1418_v8 = vmov -inf   ;;  %v745_v9 = vlaneseq }
   0xd   : > { %s1325_s16 = sshll.u32 %s1624_s12, 5  ;;  %s1324_s17 = sshll.u32 %s1624_s12, 4  ;;  %303 = vst.msk [vmem:[#allocation2] sm:$0xff] %vm302_vm1, %v1418_v8  ;;  %vm760_vm3 = vcmask 64512   ;;  %v1419_v28 = vmov 0   ;;  %v1420_v29 = vmov 0.0  }
   0xe   : > { %s275_s20 = scalar_lea.vmem %s1616_s1, %s1325_s16  ;;  %s265_s23 = scalar_lea.vmem %s1615_s0, %s1324_s17  ;;  %304 = vst.msk [vmem:[#allocation2 + $0x8] sm:$0xff] %vm302_vm1, %v1418_v8  ;;  %v746_v10 = vshrl.u32 %v745_v9, 7  ;;  %v748_v11 = vand.u32 127, %v745_v9  ;;  %1368 = vset.pattern.permute.xlu0 %v1419_v28  ;;  %1367 = vset.pattern.permute.xlu2 %v1419_v28  ;;  %vm889_vm4 = vcmask 1043456   ;;  %vm1015_vm5 = vcmask 1047556  }
   0xf   : > { %v1331_v0 = vld [vmem:[%s275_s20] sm:$0xff]  ;;  %v1333_v1 = vld [vmem:[%s275_s20 + $0x10] sm:$0xff]  ;;  %v1334_v2 = vld [vmem:[%s275_s20 + $0x18] sm:$0xff]  ;;  %305 = vst.msk [vmem:[#allocation2 + $0x10] sm:$0xff] %vm302_vm1, %v1418_v8  ;;  %1369 = vset.pattern.permute.xlu1 %v1419_v28  ;;  %s287_s26 = scalar_lea.vmem %s1617_s2, %s1324_s17  ;;  %vm1139_vm6 = vcmask 261120   ;;  %s1273_s30 = sshll.u32 %s1624_s12, 2 }
  0x10   : > { %673 = vmatpush.bf16.msra.mxu0 %v1331_v0  ;;  %717 = vmatpush.bf16.msra.mxu2 %v1333_v1  ;;  %v644_v3 = vld [vmem:[%s265_s23] sm:$0xf]  ;;  %v646_v4 = vld [vmem:[%s265_s23 + $0x8] sm:$0xf]  ;;  %v647_v6 = vld [vmem:[%s265_s23 + $0xc] sm:$0xf]  ;;  %vm749_vm2 = vcmp.gt.s32.totalorder %v748_v11, %v746_v10  ;;  %s296_s6 = scalar_lea.vmem %s1618_s3, %s1273_s30 }
  0x11   : > { %v1332_v5 = vld [vmem:[%s275_s20 + $0x8] sm:$0xff]  ;;  %739 = vmatpush.bf16.msra.mxu3 %v1334_v2  ;;  %v645_v7 = vld [vmem:[%s265_s23 + $0x4] sm:$0xf]  ;;  %306 = vst.msk [vmem:[#allocation2 + $0x18] sm:$0xff] %vm302_vm1, %v1418_v8  ;;  %v882_v50 = vld [vmem:[%s287_s26] sm:$0xf] }
  0x12   : > { %695 = vmatpush.bf16.msra.mxu1 %v1332_v5  ;;  %309 = vst.msk [vmem:[#allocation3 + $0x10] sm:$0xff] %vm302_vm1, %v1420_v29  ;;  %v884_v46 = vld [vmem:[%s287_s26 + $0x8] sm:$0xf]  ;;  %v885_v48 = vld [vmem:[%s287_s26 + $0xc] sm:$0xf]  ;;  %v891_v51 = vsel %vm889_vm4, %v882_v50, 0 }
  0x13   : > { %1302 = vmatmul.msk.bf16.vlgmr.msra.gmra.mxu0 %vm311_vm0, %v644_v3  ;;  %1312 = vmatmul.msk.bf16.vlgmr.msra.gmra.mxu2 %vm311_vm0, %v646_v4  ;;  %307 = vst.msk [vmem:[#allocation3] sm:$0xff] %vm302_vm1, %v1420_v29  ;;  %v929_v47 = vsel %vm889_vm4, %v884_v46, 0  ;;  %v948_v49 = vsel %vm889_vm4, %v885_v48, 0  ;;  %v883_v53 = vld [vmem:[%s287_s26 + $0x4] sm:$0xf]  ;;  %vm1141_vm7 = vcmask 392192  }
  0x14   : > { %1317 = vmatmul.msk.bf16.vlgmr.msra.gmra.mxu3 %vm311_vm0, %v647_v6  ;;  %308 = vst.msk [vmem:[#allocation3 + $0x8] sm:$0xff] %vm302_vm1, %v1420_v29  ;;  %v1512_v30 = vld [vmem:[#allocation2] sm:$0xff]  ;;  %938 = vmatpush.bf16.msrb.mxu2 %v929_v47  ;;  %v910_v55 = vsel %vm889_vm4, %v883_v53, 0  ;;  %vm1144_vm8 = vcmask 519168  }
  0x15   : > { %1307 = vmatmul.msk.bf16.vlgmr.msra.gmra.mxu1 %vm311_vm0, %v645_v7  ;;  %310 = vst.msk [vmem:[#allocation3 + $0x18] sm:$0xff] %vm302_vm1, %v1420_v29  ;;  %v1524_v36 = vld [vmem:[#allocation2 + $0x8] sm:$0xff]  ;;  %957 = vmatpush.bf16.msrb.mxu3 %v948_v49 }
  0x16   : > { %312 = vst.msk [vmem:[#allocation4] sm:$0xff] %vm311_vm0, %v1420_v29  ;;  %v1522_v34 = vld [vmem:[#allocation2 + $0x10] sm:$0xff]  ;;  %900 = vmatpush.bf16.msrb.mxu0 %v891_v51  ;;  %919 = vmatpush.bf16.msrb.mxu1 %v910_v55 }
  0x17   : > { %313 = vst.msk [vmem:[#allocation4 + $0x8] sm:$0xff] %vm311_vm0, %v1420_v29 }
  0x18   : > { %314 = vst.msk [vmem:[#allocation4 + $0x10] sm:$0xff] %vm311_vm0, %v1420_v29  ;;  %v759_v42 = vld [vmem:[#allocation2 + $0x18] sm:$0xff] }
  0x19   : > { %315 = vst.msk [vmem:[#allocation4 + $0x18] sm:$0xff] %vm311_vm0, %v1420_v29 }
  0x1f   : > { %v852_v47 = vld [vmem:[#allocation4 + $0x10] sm:$0xff] }
  0x90   : > { %v675_v12 = vpop.f32.mrf.mxu0 }
  0x91   : > { %v1485_v13 = vsel %vm749_vm2, -1e+30, %v675_v12 }
  0x92   : > { %v761_v14 = vsel %vm760_vm3, %v1485_v13, -inf  ;;  %v697_v15 = vpop.f32.mrf.mxu1 }
  0x93   : > { %762 = vmax.xlane.f32.xlu1 %v761_v14  ;;  %v1490_v16 = vsel %vm749_vm2, -1e+30, %v697_v15 }
  0x94   : > { %v764_v22 = vsel %vm760_vm3, %v1490_v16, -inf }
  0x96   : > { %v719_v17 = vpop.f32.mrf.mxu2 }
  0x97   : > { %v1493_v18 = vsel %vm749_vm2, -1e+30, %v719_v17  ;;  %v741_v19 = vpop.f32.mrf.mxu3 }
  0x98   : > { %v677_v20 = vpop.f32.mrf.mxu0  ;;  %v767_v21 = vsel %vm760_vm3, %v1493_v18, -inf  ;;  %v1500_v24 = vsel %vm749_vm2, -1e+30, %v741_v19 }
  0x99   : > { %768 = vmax.xlane.f32.xlu0 %v767_v21  ;;  %v770_v26 = vsel %vm760_vm3, %v1500_v24, -inf }
  0x9a   : > { %v699_v23 = vpop.f32.mrf.mxu1 }
  0x9b   : > { %765 = vmax.xlane.f32.xlu1 %v764_v22  ;;  %v823_v22 = vld [vmem:[#allocation3 + $0x10] sm:$0xff] }
  0x9e   : > { %v721_v25 = vpop.f32.mrf.mxu2 }
  0x9f   : > { %v743_v27 = vpop.f32.mrf.mxu3 }
  0xa1   : > { %771 = vmax.xlane.f32.xlu0 %v770_v26  ;;  %v824_v26 = vld [vmem:[#allocation3 + $0x18] sm:$0xff] }
 0x106   : > { %v763_v31 = vpop.xlane.xlu1 %762 }
 0x107   : > { %v1515_v32 = vmax.f32 %v1512_v30, %v763_v31  ;;  %v821_v31 = vld [vmem:[#allocation3] sm:$0xff] }
 0x109   : > { %v777_v33 = vsub.f32 %v1512_v30, %v1515_v32  ;;  %971 = vst.msk [vmem:[#allocation2] sm:$0xff] %vm302_vm1, %v1515_v32  ;;  %791 = vperm.xlu0 %1368, %v1515_v32  }
 0x10b   : > { %v781_v14 = vmul.f32 1.442695, %v777_v33 }
 0x10c   : > { %v769_v35 = vpop.xlane.xlu0 %768 }
 0x10d   : > { %v1527_v37 = vmax.f32 %v1522_v34, %v769_v35 }
 0x10e   : > { %v766_v38 = vpop.xlane.xlu1 %765 }
 0x10f   : > { %v779_v39 = vsub.f32 %v1522_v34, %v1527_v37  ;;  %973 = vst.msk [vmem:[#allocation2 + $0x10] sm:$0xff] %vm302_vm1, %v1527_v37  ;;  %v1534_v40 = vmax.f32 %v1524_v36, %v766_v38  ;;  %801 = vperm.xlu2 %1367, %v1527_v37   ;;  %v822_v38 = vld [vmem:[#allocation3 + $0x8] sm:$0xff] }
 0x111   : > { %v778_v41 = vsub.f32 %v1524_v36, %v1534_v40  ;;  %972 = vst.msk [vmem:[#allocation2 + $0x8] sm:$0xff] %vm302_vm1, %v1534_v40  ;;  %796 = vperm.xlu1 %1369, %v1534_v40   ;;  %v785_v15 = vmul.f32 1.442695, %v779_v39 }
 0x113   : > { %v783_v19 = vmul.f32 1.442695, %v778_v41 }
 0x114   : > { %v772_v43 = vpop.xlane.xlu0 %771 }
 0x115   : > { %v776_v44 = vmax.f32 %v759_v42, %v772_v43 }
 0x117   : > { %v780_v45 = vsub.f32 %v759_v42, %v776_v44  ;;  %974 = vst.msk [vmem:[#allocation2 + $0x18] sm:$0xff] %vm302_vm1, %v776_v44  ;;  %806 = vperm.xlu2 %1367, %v776_v44  }
 0x119   : > { %v787_v17 = vmul.f32 1.442695, %v780_v45 }
 0x169   : > { %v802_v52 = vpop.permute.xlu2 %801 }
 0x16a   : > { %v811_v54 = vsub.f32 %v1493_v18, %v802_v52 }
 0x16c   : > { %v817_v56 = vmul.f32 1.442695, %v811_v54 }
 0x16e   : > { %1370 = vpow2.f32 %v817_v56  ;;  %v853_v56 = vld [vmem:[#allocation4 + $0x18] sm:$0xff] }
 0x171   : > { %v807_v57 = vpop.permute.xlu2 %806 }
 0x172   : > { %v812_v58 = vsub.f32 %v1500_v24, %v807_v57  ;;  %v850_v57 = vld [vmem:[#allocation4] sm:$0xff] }
 0x174   : > { %v1371_v59 = vpop.eup %1370  ;;  %v819_v60 = vmul.f32 1.442695, %v812_v58 }
 0x175   : > { %v835_v61 = vsel %vm760_vm3, %v1371_v59, 0.0  ;;  %v880_v62 = vpack.c.bf16 %v1371_v59, %v1371_v59 }
 0x176   : > { %1372 = vpow2.f32 %v819_v60  ;;  %836 = vadd.xlane.f32.xlu2 %v835_v61 }
 0x177   : > { %1320 = vmatmul.msk.bf16.vlgmr.msrb.gmra.mxu2 %vm760_vm3, %v880_v62 }
 0x17b   : > { %v792_v63 = vpop.permute.xlu0 %791 }
 0x17c   : > { %v1373_v0 = vpop.eup %1372  ;;  %v809_v1 = vsub.f32 %v1485_v13, %v792_v63 }
 0x17d   : > { %v838_v2 = vsel %vm760_vm3, %v1373_v0, 0.0  ;;  %v881_v3 = vpack.c.bf16 %v1373_v0, %v1373_v0 }
 0x17e   : > { %v813_v4 = vmul.f32 1.442695, %v809_v1  ;;  %839 = vadd.xlane.f32.xlu0 %v838_v2  ;;  %v851_v2 = vld [vmem:[#allocation4 + $0x8] sm:$0xff] }
 0x17f   : > { %1321 = vmatmul.msk.bf16.vlgmr.msrb.gmra.mxu3 %vm760_vm3, %v881_v3 }
 0x180   : > { %1374 = vpow2.f32 %v813_v4 }
 0x183   : > { %v797_v5 = vpop.permute.xlu1 %796 }
 0x184   : > { %v810_v6 = vsub.f32 %v1490_v16, %v797_v5 }
 0x186   : > { %v1375_v7 = vpop.eup %1374  ;;  %v815_v8 = vmul.f32 1.442695, %v810_v6 }
 0x187   : > { %v829_v9 = vsel %vm760_vm3, %v1375_v7, 0.0  ;;  %v878_v10 = vpack.c.bf16 %v1375_v7, %v1375_v7 }
 0x188   : > { %1376 = vpow2.f32 %v815_v8  ;;  %830 = vadd.xlane.f32.xlu1 %v829_v9  ;;  %v1421_v9 = vmov 1983009808  }
 0x189   : > { %1318 = vmatmul.msk.bf16.vlgmr.msrb.gmra.mxu0 %vm760_vm3, %v878_v10  ;;  %1378 = vpow2.f32 %v781_v14  ;;  %v1020_v10 = vunpack.c.l.s4 %v1421_v9 }
 0x18a   : > { %1380 = vpow2.f32 %v785_v15 }
 0x18b   : > { %1382 = vpow2.f32 %v787_v17  ;;  %v1021_v17 = vunpack.c.0.s8 %v1020_v10 }
 0x18c   : > { %1384 = vpow2.f32 %v783_v19 }
 0x18e   : > { %v1377_v11 = vpop.eup %1376 }
 0x18f   : > { %v832_v12 = vsel %vm760_vm3, %v1377_v11, 0.0  ;;  %v879_v13 = vpack.c.bf16 %v1377_v11, %v1377_v11  ;;  %v1379_v16 = vpop.eup %1378 }
 0x190   : > { %833 = vadd.xlane.f32.xlu2 %v832_v12  ;;  %v1381_v18 = vpop.eup %1380  ;;  %v825_v34 = vmul.f32 %v1379_v16, %v821_v31 }
 0x191   : > { %1319 = vmatmul.msk.bf16.vlgmr.msrb.gmra.mxu1 %vm760_vm3, %v879_v13  ;;  %v1383_v20 = vpop.eup %1382  ;;  %v827_v23 = vmul.f32 %v1381_v18, %v823_v22  ;;  %v1422_v22 = vmov 1934713408  }
 0x192   : > { %v1385_v21 = vpop.eup %1384  ;;  %v828_v27 = vmul.f32 %v1383_v20, %v824_v26 }
 0x193   : > { %v826_v42 = vmul.f32 %v1385_v21, %v822_v38 }
 0x1a1   : > { %856 = vperm.xlu1 %1369, %v1379_v16  }
 0x1a8   : > { %866 = vperm.xlu2 %1367, %v1381_v18  }
 0x1b0   : > { %871 = vperm.xlu2 %1367, %v1383_v20  }
 0x1b8   : > { %861 = vperm.xlu2 %1367, %v1385_v21  }
 0x1e9   : > { %v837_v24 = vpop.xlane.xlu2 %836 }
 0x1ea   : > { %v843_v25 = vadd.f32 %v837_v24, %v827_v23  ;;  %v1044_v23 = vunpack.c.l.s4 %v1422_v22 }
 0x1ec   : > { %848 = vst.msk [vmem:[#allocation3 + $0x10] sm:$0xff] %vm302_vm1, %v843_v25 }
 0x1f1   : > { %v840_v28 = vpop.xlane.xlu0 %839 }
 0x1f2   : > { %v844_v29 = vadd.f32 %v840_v28, %v828_v27 }
 0x1f3   : > { %v984_v30 = vld [vmem:[#allocation3 + $0x10] sm:$0xff] }
 0x1f4   : > { %849 = vst.msk [vmem:[#allocation3 + $0x18] sm:$0xff] %vm302_vm1, %v844_v29  ;;  %1386 = vrcp.f32 %v984_v30  ;;  %v1045_v30 = vunpack.c.0.s8 %v1044_v23 }
 0x1fa   : > { %v1387_v32 = vpop.eup %1386  ;;  %v940_v33 = vpop.f32.mrf.mxu2 }
 0x1fb   : > { %1002 = vperm.xlu0 %1368, %v1387_v32   ;;  %v831_v35 = vpop.xlane.xlu1 %830  ;;  %v985_v36 = vld [vmem:[#allocation3 + $0x18] sm:$0xff] }
 0x1fc   : > { %v841_v37 = vadd.f32 %v831_v35, %v825_v34  ;;  %1388 = vrcp.f32 %v985_v36 }
 0x1fe   : > { %846 = vst.msk [vmem:[#allocation3] sm:$0xff] %vm302_vm1, %v841_v37 }
 0x202   : > { %v1389_v39 = vpop.eup %1388  ;;  %v942_v40 = vpop.f32.mrf.mxu2 }
 0x203   : > { %v959_v41 = vpop.f32.mrf.mxu3  ;;  %1007 = vperm.xlu1 %1369, %v1389_v39   ;;  %v834_v43 = vpop.xlane.xlu2 %833 }
 0x204   : > { %v842_v44 = vadd.f32 %v834_v43, %v826_v42 }
 0x205   : > { %v982_v45 = vld [vmem:[#allocation3] sm:$0xff] }
 0x206   : > { %847 = vst.msk [vmem:[#allocation3 + $0x8] sm:$0xff] %vm302_vm1, %v842_v44  ;;  %v902_v46 = vpop.f32.mrf.mxu0  ;;  %1390 = vrcp.f32 %v982_v45 }
 0x20b   : > { %v961_v48 = vpop.f32.mrf.mxu3  ;;  %v867_v49 = vpop.permute.xlu2 %866 }
 0x20c   : > { %v1391_v50 = vpop.eup %1390  ;;  %v876_v51 = vmul.f32 %v867_v49, %v852_v47 }
 0x20d   : > { %992 = vperm.xlu2 %1367, %v1391_v50   ;;  %v983_v52 = vld [vmem:[#allocation3 + $0x8] sm:$0xff] }
 0x20e   : > { %v965_v53 = vadd.f32 %v940_v33, %v876_v51  ;;  %v904_v54 = vpop.f32.mrf.mxu0  ;;  %v921_v55 = vpop.f32.mrf.mxu1  ;;  %1392 = vrcp.f32 %v983_v52 }
 0x210   : > { %969 = vst.msk [vmem:[#allocation4 + $0x10] sm:$0xff] %vm311_vm0, %v965_v53 }
 0x213   : > { %v872_v58 = vpop.permute.xlu2 %871  ;;  %v857_v59 = vpop.permute.xlu1 %856 }
 0x214   : > { %v1393_v60 = vpop.eup %1392  ;;  %v877_v61 = vmul.f32 %v872_v58, %v853_v56  ;;  %v874_v62 = vmul.f32 %v857_v59, %v850_v57 }
 0x215   : > { %997 = vperm.xlu2 %1367, %v1393_v60  }
 0x216   : > { %v966_v63 = vadd.f32 %v959_v41, %v877_v61  ;;  %v963_v0 = vadd.f32 %v902_v46, %v874_v62  ;;  %v923_v1 = vpop.f32.mrf.mxu1 }
 0x217   : > { %v980_v12 = vld [vmem:[#allocation4 + $0x10] sm:$0xff] }
 0x218   : > { %970 = vst.msk [vmem:[#allocation4 + $0x18] sm:$0xff] %vm311_vm0, %v966_v63 }
 0x219   : > { %967 = vst.msk [vmem:[#allocation4] sm:$0xff] %vm311_vm0, %v963_v0 }
 0x21b   : > { %v862_v3 = vpop.permute.xlu2 %861 }
 0x21c   : > { %v875_v4 = vmul.f32 %v862_v3, %v851_v2 }
 0x21e   : > { %v964_v5 = vadd.f32 %v921_v55, %v875_v4 }
 0x21f   : > { %v981_v25 = vld [vmem:[#allocation4 + $0x18] sm:$0xff] }
 0x220   : > { %968 = vst.msk [vmem:[#allocation4 + $0x8] sm:$0xff] %vm311_vm0, %v964_v5  ;;  %v978_v7 = vld [vmem:[#allocation4] sm:$0xff] }
 0x227   : > { %v979_v18 = vld [vmem:[#allocation4 + $0x8] sm:$0xff] }
 0x267   : > { %v993_v6 = vpop.permute.xlu2 %992 }
 0x268   : > { %v1010_v8 = vmul.f32 %v993_v6, %v978_v7 }
 0x26a   : > { %v1017_v15 = vrot.slane %v1010_v8, 4 }
 0x26d   : > { %v1003_v11 = vpop.permute.xlu0 %1002 }
 0x26e   : > { %v1012_v13 = vmul.f32 %v1003_v11, %v980_v12 }
 0x26f   : > { %v998_v14 = vpop.permute.xlu2 %997 }
 0x270   : > { %v1014_v16 = vrot.slane %v1012_v13, 4  ;;  %v1018_v19 = vsel %vm1015_vm5, %v1012_v13, %v1017_v15  ;;  %v1011_v20 = vmul.f32 %v998_v14, %v979_v18 }
 0x271   : > { %v1026_v24 = vperm.slane %v1018_v19, %v1021_v17 }
 0x272   : > { %v1016_v21 = vsel %vm1015_vm5, %v1014_v16, %v1010_v8  ;;  %v1029_v27 = vrot.slane %v1011_v20, 4 }
 0x273   : > { %v1022_v29 = vperm.slane %v1016_v21, %v1021_v17  ;;  %v1053_v33 = vrot.slane %v1026_v24, 4 }
 0x275   : > { %v1008_v26 = vpop.permute.xlu1 %1007  ;;  %v1041_v36 = vrot.slane %v1022_v29, 4 }
 0x276   : > { %v1013_v28 = vmul.f32 %v1008_v26, %v981_v25 }
 0x278   : > { %v1027_v31 = vrot.slane %v1013_v28, 4  ;;  %v1030_v32 = vsel %vm1015_vm5, %v1013_v28, %v1029_v27 }
 0x279   : > { %v1038_v34 = vperm.slane %v1030_v32, %v1021_v17 }
 0x27a   : > { %v1028_v35 = vsel %vm1015_vm5, %v1027_v31, %v1011_v20 }
 0x27b   : > { %v1034_v37 = vperm.slane %v1028_v35, %v1021_v17  ;;  %v1051_v38 = vrot.slane %v1038_v34, 4  ;;  %v1054_v39 = vsel %vm1015_vm5, %v1038_v34, %v1053_v33 }
 0x27c   : > { %v1062_v40 = vperm.slane %v1054_v39, %v1045_v30 }
 0x27d   : > { %v1039_v41 = vrot.slane %v1034_v37, 4  ;;  %v1042_v42 = vsel %vm1015_vm5, %v1034_v37, %v1041_v36  ;;  %v1052_v43 = vsel %vm1015_vm5, %v1051_v38, %v1026_v24 }
 0x27e   : > { %v1050_v44 = vperm.slane %v1042_v42, %v1045_v30  ;;  %v1058_v45 = vperm.slane %v1052_v43, %v1045_v30  ;;  %v1069_v46 = vrot.slane %v1062_v40, 4 }
 0x27f   : > { %v1040_v47 = vsel %vm1015_vm5, %v1039_v41, %v1022_v29 }
 0x280   : > { %v1046_v48 = vperm.slane %v1040_v47, %v1045_v30  ;;  %v1065_v49 = vrot.slane %v1050_v44, 4  ;;  %v1067_v50 = vrot.slane %v1058_v45, 4  ;;  %v1070_v51 = vsel %vm1015_vm5, 0.0, %v1069_v46 }
 0x281   : > { %v1082_v52 = vsel %vm1015_vm5, %v1069_v46, %v1058_v45  ;;  %v1087_v53 = vrot.slane %v1070_v51, 4 }
 0x282   : > { %v1066_v54 = vsel %vm1015_vm5, 0.0, %v1065_v49  ;;  %v1063_v55 = vrot.slane %v1046_v48, 4  ;;  %v1068_v56 = vsel %vm1015_vm5, 0.0, %v1067_v50  ;;  %v1071_v57 = vsel %vm1015_vm5, %v1065_v49, %v1046_v48 }
 0x283   : > { %v1076_v58 = vrot.slane %v1066_v54, 4  ;;  %v1075_v59 = vperm.slane %v1071_v57, %v1021_v17  ;;  %v1086_v60 = vperm.slane %v1082_v52, %v1021_v17  ;;  %v1088_v61 = vsel %vm1015_vm5, %v1087_v53, %v1068_v56 }
 0x284   : > { %v1064_v62 = vsel %vm1015_vm5, 0.0, %v1063_v55  ;;  %v1092_v63 = vperm.slane %v1088_v61, %v1021_v17 }
 0x285   : > { %v1077_v0 = vsel %vm1015_vm5, %v1076_v58, %v1064_v62  ;;  %v1095_v1 = vrot.slane %v1075_v59, 4  ;;  %v1107_v2 = vrot.slane %v1086_v60, 4 }
 0x286   : > { %v1081_v3 = vperm.slane %v1077_v0, %v1021_v17  ;;  %v1105_v4 = vrot.slane %v1092_v63, 4 }
 0x287   : > { %v1108_v5 = vsel %vm1015_vm5, %v1092_v63, %v1107_v2 }
 0x288   : > { %v1096_v6 = vsel %vm1015_vm5, %v1081_v3, %v1095_v1  ;;  %v1116_v7 = vperm.slane %v1108_v5, %v1045_v30  ;;  %v1093_v8 = vrot.slane %v1081_v3, 4  ;;  %v1106_v9 = vsel %vm1015_vm5, %v1105_v4, %v1086_v60 }
 0x289   : > { %v1104_v10 = vperm.slane %v1096_v6, %v1045_v30  ;;  %v1112_v11 = vperm.slane %v1106_v9, %v1045_v30 }
 0x28a   : > { %v1121_v12 = vrot.slane %v1116_v7, 4  ;;  %v1094_v13 = vsel %vm1015_vm5, %v1093_v8, %v1075_v59 }
 0x28b   : > { %v1123_v14 = vrot.slane %v1104_v10, 4  ;;  %v1100_v15 = vperm.slane %v1094_v13, %v1045_v30  ;;  %v1117_v16 = vrot.slane %v1112_v11, 4 }
 0x28c   : > { %v1122_v17 = vsel %vm1015_vm5, %v1121_v12, %v1104_v10 }
 0x28d   : > { %1130 = vrot.lane.b32.xlu0 %v1122_v17, %s1423_s27  ;;  %v1124_v18 = vsel %vm1015_vm5, %v1116_v7, %v1123_v14  ;;  %v1119_v19 = vrot.slane %v1100_v15, 4  ;;  %v1118_v20 = vsel %vm1015_vm5, %v1117_v16, %v1100_v15 }
 0x28e   : > { %1134 = vrot.lane.b32.xlu2 %v1124_v18, %s1424_s28 }
 0x28f   : > { %v1120_v21 = vsel %vm1015_vm5, %v1112_v11, %v1119_v19 }
 0x290   : > { %1126 = vrot.lane.b32.xlu1 %v1120_v21, %s1425_s29 }
 0x2e8   : > { %v1135_v25 = vpop.permute.xlu2 %1134 }
 0x2ff   : > { %v1131_v23 = vpop.permute.xlu0 %1130 }
 0x302   : > { %v1127_v22 = vpop.permute.xlu1 %1126 }
 0x303   : > { %v1138_v24 = vsel %vm311_vm0, %v1118_v20, %v1127_v22 }
 0x304   : > { %v1140_v26 = vsel %vm1139_vm6, %v1138_v24, %v1131_v23 }
 0x305   : > { %v1142_v27 = vsel %vm1141_vm7, %v1140_v26, %v1135_v25 }
 0x306   : > { %v1143_v28 = vpack.c.bf16 %v1142_v27, %v1142_v27 }
 0x308   : > { %1145 = vst.msk [vmem:[%s296_s6] sm:$0xf] %vm1144_vm8, %v1143_v28 }
 0x309 PF: > { %s13_s14 = sadd.s32 1, %s1416_s14   ;;  %s1619_s12 = smov %s1412_s13 }
 0x30a   : > { %p10_p5 = scmp.ge.s32.totalorder %s13_s14, 4   ;;  %s1620_s13 = smov %s1622_s15 }
 0x30c   :  { %12 = sbr.rel (!%p10_p5) target bundleno = 2 (0x2), region = 84 }

</bundles_post_ra>
